<compile_context>
chip_gen: v7x
topology: tpu7x:2x2x1
jax: 0.10.0
libtpu: 0.0.40
codegen_flags: <defaults>
</compile_context>

<pallas_src>
import jax
import jax.numpy as jnp
from jax.experimental import pallas as pl
from jax.experimental.pallas import tpu as pltpu


def _gather_kernel(idx_ref, cbT_ref, out_ref):
    # idx_ref: (1, TM)          int32 indices, lane-dense
    # cbT_ref: (N_BITS, NUM)    codebook transposed (bits on sublanes), full
    # out_ref: (N_BITS, TM)     gathered values, lane-dense
    idx = idx_ref[...]                      # (1, TM)
    cbT = cbT_ref[...]                      # (N_BITS, NUM)
    n_bits, num_codes = cbT.shape
    tm = idx.shape[1]

    # Select-chain gather: each index matches exactly one code, so a chain of
    # selects reproduces B[idx] without any matmul. num_codes is small (16),
    # so this unrolls into a handful of VPU compare/select ops per tile.
    # TODO(synk): for very large codebooks switch to a DMA gather instead of
    # unrolling over codes.
    acc = jnp.zeros((n_bits, tm), dtype=out_ref.dtype)
    for c in range(num_codes):
        col = cbT[:, c:c + 1]               # (N_BITS, 1), static slice
        acc = jnp.where(idx == c, col, acc)  # broadcast (1,TM) x (N_BITS,1)
    out_ref[...] = acc


def decimal_to_binary(decimal_tensor, codebook, *, tile_m=32768):
    """Pallas equivalent of `codebook[decimal_tensor]`."""
    assert codebook.ndim == 2, "codebook must be (num_codes, n_bits)"
    num_codes, n_bits = codebook.shape
    orig_shape = decimal_tensor.shape

    idx_flat = decimal_tensor.reshape(-1).astype(jnp.int32)
    m = idx_flat.shape[0]

    # Lane-dense index layout: 128 indices per lane-row.
    m_128 = max(128, pl.cdiv(m, 128) * 128)
    tile_m = min(tile_m, m_128)
    tile_m = max(128, (tile_m // 128) * 128)        # multiple of 128 lanes
    m_pad = pl.cdiv(m_128, tile_m) * tile_m

    if m_pad != m:
        idx_flat = jnp.pad(idx_flat, (0, m_pad - m), constant_values=0)
    idx_2d = idx_flat.reshape(1, m_pad)             # (1, M) — lane-dense

    cbT = codebook.T                                # (n_bits, num_codes)

    grid = (m_pad // tile_m,)
    out_t = pl.pallas_call(
        _gather_kernel,
        out_shape=jax.ShapeDtypeStruct((n_bits, m_pad), codebook.dtype),
        grid_spec=pltpu.PrefetchScalarGridSpec(
            num_scalar_prefetch=0,
            grid=grid,
            in_specs=[
                pl.BlockSpec((1, tile_m), lambda i: (0, i)),           # indices
                pl.BlockSpec((n_bits, num_codes), lambda i: (0, 0)),   # codebook^T
            ],
            out_specs=pl.BlockSpec((n_bits, tile_m), lambda i: (0, i)),
        ),
        compiler_params=pltpu.CompilerParams(
            dimension_semantics=("parallel",),
        ),
    )(idx_2d, cbT)

    out = out_t[:, :m].T                            # (m, n_bits)
    return out.reshape(*orig_shape, n_bits)


def make_binary_codebook(num_codes, n_bits, dtype=jnp.float32):
    """B[i, j] = j-th bit (MSB first) of the binary expansion of i."""
    i = jnp.arange(num_codes, dtype=jnp.int32)[:, None]     # (num_codes, 1)
    j = jnp.arange(n_bits, dtype=jnp.int32)[None, :]         # (1, n_bits)
    shifts = (n_bits - 1) - j
    bits = jnp.right_shift(i, shifts) & 1
    return bits.astype(dtype)


if __name__ == "__main__":
    key = jax.random.PRNGKey(0)

    NUM_CODES = 16
    N_BITS = 8
    codebook = make_binary_codebook(NUM_CODES, N_BITS, dtype=jnp.float32)

    # Small integer index tensor (e.g. a decoded "decimal" feature map).
    decimal_tensor = jax.random.randint(
        key, shape=(2, 4, 16, 16), minval=0, maxval=NUM_CODES, dtype=jnp.int32
    )

    out = decimal_to_binary(decimal_tensor, codebook)
    out = jax.block_until_ready(out)

    # Reference: plain JAX fancy-indexing (same semantics as torch B[idx]).
    ref = codebook[decimal_tensor]
    assert out.shape == (2, 4, 16, 16, N_BITS), out.shape
    assert jnp.allclose(out, ref), "Pallas gather mismatch vs reference"

    print("KERNEL_OK")
</pallas_src>

<mosaic_0001>
module attributes {stable_mosaic.version = 11 : i64} {
  func.func @_gather_kernel(%arg0: i32, %arg1: memref<1x2048xi32, #tpu.memory_space<vmem>>, %arg2: memref<8x16xf32, #tpu.memory_space<vmem>>, %arg3: memref<8x2048xf32, #tpu.memory_space<vmem>>) attributes {dimension_semantics = [#tpu.dimension_semantics<parallel>], iteration_bounds = array<i64: 1>, scalar_prefetch = 0 : i64, scratch_operands = 0 : i64, tpu.core_type = #tpu.core_type<tc>, window_params = [{transform_indices = @transform_0, window_bounds = array<i64: 1, 2048>}, {pipeline_mode = #tpu.pipeline_mode<synchronous>, transform_indices = @transform_1, window_bounds = array<i64: 8, 16>}, {transform_indices = @transform_2, window_bounds = array<i64: 8, 2048>}]} {
    %c0 = arith.constant 0 : index
    %c0_0 = arith.constant 0 : index
    %0 = vector.load %arg1[%c0, %c0_0] : memref<1x2048xi32, #tpu.memory_space<vmem>>, vector<1x2048xi32>
    %c0_1 = arith.constant 0 : index
    %c0_2 = arith.constant 0 : index
    %1 = vector.load %arg2[%c0_1, %c0_2] : memref<8x16xf32, #tpu.memory_space<vmem>>, vector<8x16xf32>
    %cst = arith.constant 0.000000e+00 : f32
    %2 = vector.broadcast %cst : f32 to vector<8x2048xf32>
    %3 = vector.extract_strided_slice %1 {offsets = [0, 0], sizes = [8, 1], strides = [1, 1]} : vector<8x16xf32> to vector<8x1xf32>
    %c0_i32 = arith.constant 0 : i32
    %4 = vector.broadcast %c0_i32 : i32 to vector<1x2048xi32>
    %5 = arith.cmpi eq, %0, %4 : vector<1x2048xi32>
    %6 = vector.shape_cast %5 : vector<1x2048xi1> to vector<1x2048xi1>
    %7 = vector.broadcast %6 : vector<1x2048xi1> to vector<8x2048xi1>
    %8 = vector.shape_cast %3 : vector<8x1xf32> to vector<8x1xf32>
    %9 = vector.broadcast %8 : vector<8x1xf32> to vector<8x2048xf32>
    %10 = arith.select %7, %9, %2 : vector<8x2048xi1>, vector<8x2048xf32>
    %11 = vector.extract_strided_slice %1 {offsets = [0, 1], sizes = [8, 1], strides = [1, 1]} : vector<8x16xf32> to vector<8x1xf32>
    %c1_i32 = arith.constant 1 : i32
    %12 = vector.broadcast %c1_i32 : i32 to vector<1x2048xi32>
    %13 = arith.cmpi eq, %0, %12 : vector<1x2048xi32>
    %14 = vector.shape_cast %13 : vector<1x2048xi1> to vector<1x2048xi1>
    %15 = vector.broadcast %14 : vector<1x2048xi1> to vector<8x2048xi1>
    %16 = vector.shape_cast %11 : vector<8x1xf32> to vector<8x1xf32>
    %17 = vector.broadcast %16 : vector<8x1xf32> to vector<8x2048xf32>
    %18 = arith.select %15, %17, %10 : vector<8x2048xi1>, vector<8x2048xf32>
    %19 = vector.extract_strided_slice %1 {offsets = [0, 2], sizes = [8, 1], strides = [1, 1]} : vector<8x16xf32> to vector<8x1xf32>
    %c2_i32 = arith.constant 2 : i32
    %20 = vector.broadcast %c2_i32 : i32 to vector<1x2048xi32>
    %21 = arith.cmpi eq, %0, %20 : vector<1x2048xi32>
    %22 = vector.shape_cast %21 : vector<1x2048xi1> to vector<1x2048xi1>
    %23 = vector.broadcast %22 : vector<1x2048xi1> to vector<8x2048xi1>
    %24 = vector.shape_cast %19 : vector<8x1xf32> to vector<8x1xf32>
    %25 = vector.broadcast %24 : vector<8x1xf32> to vector<8x2048xf32>
    %26 = arith.select %23, %25, %18 : vector<8x2048xi1>, vector<8x2048xf32>
    %27 = vector.extract_strided_slice %1 {offsets = [0, 3], sizes = [8, 1], strides = [1, 1]} : vector<8x16xf32> to vector<8x1xf32>
    %c3_i32 = arith.constant 3 : i32
    %28 = vector.broadcast %c3_i32 : i32 to vector<1x2048xi32>
    %29 = arith.cmpi eq, %0, %28 : vector<1x2048xi32>
    %30 = vector.shape_cast %29 : vector<1x2048xi1> to vector<1x2048xi1>
    %31 = vector.broadcast %30 : vector<1x2048xi1> to vector<8x2048xi1>
    %32 = vector.shape_cast %27 : vector<8x1xf32> to vector<8x1xf32>
    %33 = vector.broadcast %32 : vector<8x1xf32> to vector<8x2048xf32>
    %34 = arith.select %31, %33, %26 : vector<8x2048xi1>, vector<8x2048xf32>
    %35 = vector.extract_strided_slice %1 {offsets = [0, 4], sizes = [8, 1], strides = [1, 1]} : vector<8x16xf32> to vector<8x1xf32>
    %c4_i32 = arith.constant 4 : i32
    %36 = vector.broadcast %c4_i32 : i32 to vector<1x2048xi32>
    %37 = arith.cmpi eq, %0, %36 : vector<1x2048xi32>
    %38 = vector.shape_cast %37 : vector<1x2048xi1> to vector<1x2048xi1>
    %39 = vector.broadcast %38 : vector<1x2048xi1> to vector<8x2048xi1>
    %40 = vector.shape_cast %35 : vector<8x1xf32> to vector<8x1xf32>
    %41 = vector.broadcast %40 : vector<8x1xf32> to vector<8x2048xf32>
    %42 = arith.select %39, %41, %34 : vector<8x2048xi1>, vector<8x2048xf32>
    %43 = vector.extract_strided_slice %1 {offsets = [0, 5], sizes = [8, 1], strides = [1, 1]} : vector<8x16xf32> to vector<8x1xf32>
    %c5_i32 = arith.constant 5 : i32
    %44 = vector.broadcast %c5_i32 : i32 to vector<1x2048xi32>
    %45 = arith.cmpi eq, %0, %44 : vector<1x2048xi32>
    %46 = vector.shape_cast %45 : vector<1x2048xi1> to vector<1x2048xi1>
    %47 = vector.broadcast %46 : vector<1x2048xi1> to vector<8x2048xi1>
    %48 = vector.shape_cast %43 : vector<8x1xf32> to vector<8x1xf32>
    %49 = vector.broadcast %48 : vector<8x1xf32> to vector<8x2048xf32>
    %50 = arith.select %47, %49, %42 : vector<8x2048xi1>, vector<8x2048xf32>
    %51 = vector.extract_strided_slice %1 {offsets = [0, 6], sizes = [8, 1], strides = [1, 1]} : vector<8x16xf32> to vector<8x1xf32>
    %c6_i32 = arith.constant 6 : i32
    %52 = vector.broadcast %c6_i32 : i32 to vector<1x2048xi32>
    %53 = arith.cmpi eq, %0, %52 : vector<1x2048xi32>
    %54 = vector.shape_cast %53 : vector<1x2048xi1> to vector<1x2048xi1>
    %55 = vector.broadcast %54 : vector<1x2048xi1> to vector<8x2048xi1>
    %56 = vector.shape_cast %51 : vector<8x1xf32> to vector<8x1xf32>
    %57 = vector.broadcast %56 : vector<8x1xf32> to vector<8x2048xf32>
    %58 = arith.select %55, %57, %50 : vector<8x2048xi1>, vector<8x2048xf32>
    %59 = vector.extract_strided_slice %1 {offsets = [0, 7], sizes = [8, 1], strides = [1, 1]} : vector<8x16xf32> to vector<8x1xf32>
    %c7_i32 = arith.constant 7 : i32
    %60 = vector.broadcast %c7_i32 : i32 to vector<1x2048xi32>
    %61 = arith.cmpi eq, %0, %60 : vector<1x2048xi32>
    %62 = vector.shape_cast %61 : vector<1x2048xi1> to vector<1x2048xi1>
    %63 = vector.broadcast %62 : vector<1x2048xi1> to vector<8x2048xi1>
    %64 = vector.shape_cast %59 : vector<8x1xf32> to vector<8x1xf32>
    %65 = vector.broadcast %64 : vector<8x1xf32> to vector<8x2048xf32>
    %66 = arith.select %63, %65, %58 : vector<8x2048xi1>, vector<8x2048xf32>
    %67 = vector.extract_strided_slice %1 {offsets = [0, 8], sizes = [8, 1], strides = [1, 1]} : vector<8x16xf32> to vector<8x1xf32>
    %c8_i32 = arith.constant 8 : i32
    %68 = vector.broadcast %c8_i32 : i32 to vector<1x2048xi32>
    %69 = arith.cmpi eq, %0, %68 : vector<1x2048xi32>
    %70 = vector.shape_cast %69 : vector<1x2048xi1> to vector<1x2048xi1>
    %71 = vector.broadcast %70 : vector<1x2048xi1> to vector<8x2048xi1>
    %72 = vector.shape_cast %67 : vector<8x1xf32> to vector<8x1xf32>
    %73 = vector.broadcast %72 : vector<8x1xf32> to vector<8x2048xf32>
    %74 = arith.select %71, %73, %66 : vector<8x2048xi1>, vector<8x2048xf32>
    %75 = vector.extract_strided_slice %1 {offsets = [0, 9], sizes = [8, 1], strides = [1, 1]} : vector<8x16xf32> to vector<8x1xf32>
    %c9_i32 = arith.constant 9 : i32
    %76 = vector.broadcast %c9_i32 : i32 to vector<1x2048xi32>
    %77 = arith.cmpi eq, %0, %76 : vector<1x2048xi32>
    %78 = vector.shape_cast %77 : vector<1x2048xi1> to vector<1x2048xi1>
    %79 = vector.broadcast %78 : vector<1x2048xi1> to vector<8x2048xi1>
    %80 = vector.shape_cast %75 : vector<8x1xf32> to vector<8x1xf32>
    %81 = vector.broadcast %80 : vector<8x1xf32> to vector<8x2048xf32>
    %82 = arith.select %79, %81, %74 : vector<8x2048xi1>, vector<8x2048xf32>
    %83 = vector.extract_strided_slice %1 {offsets = [0, 10], sizes = [8, 1], strides = [1, 1]} : vector<8x16xf32> to vector<8x1xf32>
    %c10_i32 = arith.constant 10 : i32
    %84 = vector.broadcast %c10_i32 : i32 to vector<1x2048xi32>
    %85 = arith.cmpi eq, %0, %84 : vector<1x2048xi32>
    %86 = vector.shape_cast %85 : vector<1x2048xi1> to vector<1x2048xi1>
    %87 = vector.broadcast %86 : vector<1x2048xi1> to vector<8x2048xi1>
    %88 = vector.shape_cast %83 : vector<8x1xf32> to vector<8x1xf32>
    %89 = vector.broadcast %88 : vector<8x1xf32> to vector<8x2048xf32>
    %90 = arith.select %87, %89, %82 : vector<8x2048xi1>, vector<8x2048xf32>
    %91 = vector.extract_strided_slice %1 {offsets = [0, 11], sizes = [8, 1], strides = [1, 1]} : vector<8x16xf32> to vector<8x1xf32>
    %c11_i32 = arith.constant 11 : i32
    %92 = vector.broadcast %c11_i32 : i32 to vector<1x2048xi32>
    %93 = arith.cmpi eq, %0, %92 : vector<1x2048xi32>
    %94 = vector.shape_cast %93 : vector<1x2048xi1> to vector<1x2048xi1>
    %95 = vector.broadcast %94 : vector<1x2048xi1> to vector<8x2048xi1>
    %96 = vector.shape_cast %91 : vector<8x1xf32> to vector<8x1xf32>
    %97 = vector.broadcast %96 : vector<8x1xf32> to vector<8x2048xf32>
    %98 = arith.select %95, %97, %90 : vector<8x2048xi1>, vector<8x2048xf32>
    %99 = vector.extract_strided_slice %1 {offsets = [0, 12], sizes = [8, 1], strides = [1, 1]} : vector<8x16xf32> to vector<8x1xf32>
    %c12_i32 = arith.constant 12 : i32
    %100 = vector.broadcast %c12_i32 : i32 to vector<1x2048xi32>
    %101 = arith.cmpi eq, %0, %100 : vector<1x2048xi32>
    %102 = vector.shape_cast %101 : vector<1x2048xi1> to vector<1x2048xi1>
    %103 = vector.broadcast %102 : vector<1x2048xi1> to vector<8x2048xi1>
    %104 = vector.shape_cast %99 : vector<8x1xf32> to vector<8x1xf32>
    %105 = vector.broadcast %104 : vector<8x1xf32> to vector<8x2048xf32>
    %106 = arith.select %103, %105, %98 : vector<8x2048xi1>, vector<8x2048xf32>
    %107 = vector.extract_strided_slice %1 {offsets = [0, 13], sizes = [8, 1], strides = [1, 1]} : vector<8x16xf32> to vector<8x1xf32>
    %c13_i32 = arith.constant 13 : i32
    %108 = vector.broadcast %c13_i32 : i32 to vector<1x2048xi32>
    %109 = arith.cmpi eq, %0, %108 : vector<1x2048xi32>
    %110 = vector.shape_cast %109 : vector<1x2048xi1> to vector<1x2048xi1>
    %111 = vector.broadcast %110 : vector<1x2048xi1> to vector<8x2048xi1>
    %112 = vector.shape_cast %107 : vector<8x1xf32> to vector<8x1xf32>
    %113 = vector.broadcast %112 : vector<8x1xf32> to vector<8x2048xf32>
    %114 = arith.select %111, %113, %106 : vector<8x2048xi1>, vector<8x2048xf32>
    %115 = vector.extract_strided_slice %1 {offsets = [0, 14], sizes = [8, 1], strides = [1, 1]} : vector<8x16xf32> to vector<8x1xf32>
    %c14_i32 = arith.constant 14 : i32
    %116 = vector.broadcast %c14_i32 : i32 to vector<1x2048xi32>
    %117 = arith.cmpi eq, %0, %116 : vector<1x2048xi32>
    %118 = vector.shape_cast %117 : vector<1x2048xi1> to vector<1x2048xi1>
    %119 = vector.broadcast %118 : vector<1x2048xi1> to vector<8x2048xi1>
    %120 = vector.shape_cast %115 : vector<8x1xf32> to vector<8x1xf32>
    %121 = vector.broadcast %120 : vector<8x1xf32> to vector<8x2048xf32>
    %122 = arith.select %119, %121, %114 : vector<8x2048xi1>, vector<8x2048xf32>
    %123 = vector.extract_strided_slice %1 {offsets = [0, 15], sizes = [8, 1], strides = [1, 1]} : vector<8x16xf32> to vector<8x1xf32>
    %c15_i32 = arith.constant 15 : i32
    %124 = vector.broadcast %c15_i32 : i32 to vector<1x2048xi32>
    %125 = arith.cmpi eq, %0, %124 : vector<1x2048xi32>
    %126 = vector.shape_cast %125 : vector<1x2048xi1> to vector<1x2048xi1>
    %127 = vector.broadcast %126 : vector<1x2048xi1> to vector<8x2048xi1>
    %128 = vector.shape_cast %123 : vector<8x1xf32> to vector<8x1xf32>
    %129 = vector.broadcast %128 : vector<8x1xf32> to vector<8x2048xf32>
    %130 = arith.select %127, %129, %122 : vector<8x2048xi1>, vector<8x2048xf32>
    %c0_3 = arith.constant 0 : index
    %c0_4 = arith.constant 0 : index
    %131 = vector.load %arg3[%c0_3, %c0_4] : memref<8x2048xf32, #tpu.memory_space<vmem>>, vector<8x2048xf32>
    tpu.vector_store %arg3[%c0_3, %c0_4], %130 {strides = array<i32>} : memref<8x2048xf32, #tpu.memory_space<vmem>>, vector<8x2048xf32>,
    return
  }
  func.func @transform_0(%arg0: i32) -> (i32, i32) {
    %c0_i32 = arith.constant 0 : i32
    %c0_i32_0 = arith.constant 0 : i32
    return %c0_i32, %arg0 : i32, i32
  }
  func.func @transform_1(%arg0: i32) -> (i32, i32) {
    %c0_i32 = arith.constant 0 : i32
    %c0_i32_0 = arith.constant 0 : i32
    %c0_i32_1 = arith.constant 0 : i32
    return %c0_i32, %c0_i32_0 : i32, i32
  }
  func.func @transform_2(%arg0: i32) -> (i32, i32) {
    %c0_i32 = arith.constant 0 : i32
    %c0_i32_0 = arith.constant 0 : i32
    return %c0_i32, %arg0 : i32, i32
  }
}

</mosaic_0001>

<bundles_post_ra>
// kernel: tpu_custom_call.1
= control target key start
LH: loop header
LB: loop body
LE: loop exit
PB: predicated region body
PF: predicated region fallthrough
CT: control target
= control target key end

     0   :  { %7 = vsyncpa [#allocation3], 0  ;;  %s5233_s0 = inlined_call_operand.hbm [shape: s32[1,2048], index: 0, kind: input, shape index: {}]   ;;  %s5234_s1 = inlined_call_operand.hbm [shape: f32[8,16], index: 1, kind: input, shape index: {}]   ;;  %s5235_s2 = inlined_call_operand.hbm [shape: f32[8,2048], index: 2, kind: output, shape index: {}]  }
   0x1   :  { %8 = vsyncpa [#allocation6], 0 }
   0x2   :  { %9 = vsyncpa [#allocation4], 0  ;;  %s1846_s9 = smov [#allocation2]   ;;  %s1847_s11 = smov [#allocation5]  }
   0x3   :  { %s16_s10 = sshll.u32 %s1846_s9, 4  ;;  %s26_s12 = sshll.u32 %s1847_s11, 4  ;;  %s17_s10 = int_to_ptr.vmem [resolvable:$true] %s16_s10  ;;  %s27_s12 = int_to_ptr.vmem [resolvable:$true] %s26_s12 }
   0x4   :  { %s1774_s15 = scalar_lea.hbm %s5233_s0, 256 }
   0x5   :  { %p1775_p0 = scmp.ne.s32.totalorder %s5233_s0, %s1774_s15  ;;  %p1778_p1 = scmp.lt.u32.totalorder %s1774_s15, %s5233_s0 }
   0x7   :  { %p1780_p2 = pnand %p1778_p1, %p1775_p0 }
   0x9   :  { %1783 = shalt.err (!%p1780_p2)
}
   0xa   :  { %s1784_s20 = scalar_lea.vmem %s17_s10, 256  ;;  %p1789_p4 = scmp.lt.s32.totalorder %s17_s10, %s17_s10 }
   0xb   :  { %p1785_p3 = scmp.ne.s32.totalorder %s17_s10, %s1784_s20  ;;  %p1790_p5 = scmp.lt.s32.totalorder %s1784_s20, %s1784_s20 }
   0xd   :  { %p1791_p6 = por %p1790_p5, %p1789_p4 }
   0xf   :  { %p1792_p7 = pnand %p1791_p6, %p1785_p3 }
  0x11   :  { %1795 = shalt.err (!%p1792_p7)
}
  0x12   :  { %19 = dma.hbm_to_vmem [thread:$0]  %s5233_s0, 256, %s17_s10, [#allocation3]  }
  0x13   :  { %s1796_s25 = scalar_lea.hbm %s5234_s1, 128 }
  0x14   :  { %p1797_p8 = scmp.ne.s32.totalorder %s5234_s1, %s1796_s25  ;;  %p1800_p9 = scmp.lt.u32.totalorder %s1796_s25, %s5234_s1 }
  0x16   :  { %p1802_p10 = pnand %p1800_p9, %p1797_p8 }
  0x18   :  { %1805 = shalt.err (!%p1802_p10)
}
  0x19   :  { %s1806_s30 = scalar_lea.vmem %s27_s12, 128  ;;  %p1811_p12 = scmp.lt.s32.totalorder %s27_s12, %s27_s12 }
  0x1a   :  { %p1807_p11 = scmp.ne.s32.totalorder %s27_s12, %s1806_s30  ;;  %p1812_p13 = scmp.lt.s32.totalorder %s1806_s30, %s1806_s30 }
  0x1c   :  { %p1813_p0 = por %p1812_p13, %p1811_p12 }
  0x1e   :  { %p1814_p1 = pnand %p1813_p0, %p1807_p11 }
  0x20   :  { %1817 = shalt.err (!%p1814_p1)
}
  0x21   :  { %29 = dma.hbm_to_vmem [thread:$0]  %s5234_s1, 128, %s27_s12, [#allocation6]  }
  0x22   :  { %1840 = dma.done.wait [#allocation3], 256  }
  0x23   :  { %1841 = vsyncadd [#allocation3], 4294967040 }
  0x24   :  { %1842 = dma.done.wait [#allocation6], 128  }
  0x25   :  { %1843 = vsyncadd [#allocation6], 4294967168  ;;  %v1848_v0 = vmov 2   ;;  %v5236_v1 = vmov 0   ;;  %v38_v2 = vld [vmem:[#allocation5] sm:$0xff]  ;;  %v1850_v3 = vmov 3   ;;  %v43_v17 = vlaneseq }
  0x26   :  { %1757 = vset.pattern.permute.xlu1 %v1848_v0  ;;  %1755 = vset.pattern.permute.xlu0 %v5236_v1  ;;  %v1851_v4 = vmov 1   ;;  %v1852_v5 = vmov 4   ;;  %v1853_v6 = vmov 5   ;;  %v1854_v7 = vmov 6   ;;  %v1905_v19 = vld [vmem:[#allocation2] sm:$0xff]  ;;  %v1907_v20 = vld [vmem:[#allocation2 + $0x8] sm:$0xff] }
  0x27   :  { %333 = vperm.xlu1 %1757, %v38_v2   ;;  %125 = vperm.xlu0 %1755, %v38_v2   ;;  %v1855_v8 = vmov 8   ;;  %v1856_v9 = vmov 7   ;;  %v1857_v10 = vmov 11   ;;  %v1858_v11 = vmov 9   ;;  %s1864_s1 = smov [#allocation7]  }
  0x28   :  { %v1859_v12 = vmov 14   ;;  %v1860_v13 = vmov 10   ;;  %v1861_v14 = vmov 15   ;;  %v1862_v15 = vmov 12   ;;  %s1726_s4 = sshll.u32 %s1864_s1, 4  ;;  %s1727_s4 = int_to_ptr.vmem [resolvable:$true] %s1726_s4 }
  0x29   :  { %v1863_v16 = vmov 13   ;;  %v44_v18 = vshrl.u32 %v43_v17, 7  ;;  %vm39_vm0 = vcmp.eq.s32.totalorder %v1905_v19, 0  ;;  %vm40_vm1 = vcmp.eq.s32.totalorder %v1907_v20, 0  ;;  %s1818_s5 = scalar_lea.vmem %s1727_s4, 2048  ;;  %p1823_p3 = scmp.lt.s32.totalorder %s1727_s4, %s1727_s4 }
  0x2a   :  { %vm144_vm2 = vcmp.eq.s32.totalorder %v1905_v19, 1  ;;  %vm145_vm3 = vcmp.eq.s32.totalorder %v1907_v20, 1  ;;  %v1926_v27 = vsel %vm39_vm0, 1, %v5236_v1  ;;  %v1933_v30 = vsel %vm40_vm1, 1, %v5236_v1  ;;  %p1819_p2 = scmp.ne.s32.totalorder %s1727_s4, %s1818_s5  ;;  %p1824_p4 = scmp.lt.s32.totalorder %s1818_s5, %s1818_s5 }
  0x2b   :  { %1758 = vset.pattern.permute.xlu1 %v1850_v3  ;;  %1756 = vset.pattern.permute.xlu0 %v1851_v4  ;;  %v1910_v21 = vsub.s32 0, %v44_v18  ;;  %v1912_v22 = vsub.s32 1, %v44_v18  ;;  %v1914_v23 = vsub.s32 2, %v44_v18  ;;  %v1919_v24 = vsub.s32 3, %v44_v18 }
  0x2c   :  { %437 = vperm.xlu1 %1758, %v38_v2   ;;  %229 = vperm.xlu0 %1756, %v38_v2   ;;  %v1921_v25 = vsub.s32 4, %v44_v18  ;;  %v1923_v26 = vsub.s32 5, %v44_v18  ;;  %v1928_v28 = vsub.s32 6, %v44_v18  ;;  %v1930_v29 = vsub.s32 7, %v44_v18  ;;  %p1825_p5 = por %p1824_p4, %p1823_p3 }
  0x2d   :  { %v1936_v31 = vsel %vm144_vm2, 1, %v5236_v1  ;;  %v1939_v32 = vsel %vm145_vm3, 1, %v5236_v1  ;;  %v46_v33 = vrot.slane %v1926_v27, %v1910_v21  ;;  %v50_v34 = vrot.slane %v1926_v27, %v1912_v22 }
  0x2e   :  { %v54_v35 = vrot.slane %v1926_v27, %v1914_v23  ;;  %vm248_vm4 = vcmp.eq.s32.totalorder %v1905_v19, 2  ;;  %v58_v36 = vrot.slane %v1926_v27, %v1919_v24  ;;  %v62_v37 = vrot.slane %v1926_v27, %v1921_v25  ;;  %p1826_p6 = pnand %p1825_p5, %p1819_p2 }
  0x2f   :  { %v66_v38 = vrot.slane %v1926_v27, %v1923_v26  ;;  %vm249_vm5 = vcmp.eq.s32.totalorder %v1907_v20, 2  ;;  %v70_v39 = vrot.slane %v1926_v27, %v1928_v28  ;;  %v74_v40 = vrot.slane %v1926_v27, %v1930_v29 }
  0x30   :  { %1759 = vset.pattern.permute.xlu1 %v1852_v5  ;;  %1760 = vset.pattern.permute.xlu0 %v1853_v6  ;;  %v78_v41 = vrot.slane %v1933_v30, %v1910_v21  ;;  %v82_v42 = vrot.slane %v1933_v30, %v1912_v22  ;;  %v86_v43 = vrot.slane %v1933_v30, %v1914_v23  ;;  %v1996_v58 = vsel %vm248_vm4, 1, %v5236_v1 }
  0x31   :  { %541 = vperm.xlu1 %1759, %v38_v2   ;;  %645 = vperm.xlu0 %1760, %v38_v2   ;;  %v90_v44 = vrot.slane %v1933_v30, %v1919_v24  ;;  %v94_v45 = vrot.slane %v1933_v30, %v1921_v25  ;;  %v98_v46 = vrot.slane %v1933_v30, %v1923_v26  ;;  %v2015_v3 = vsel %vm249_vm5, 1, %v5236_v1 }
  0x32   :  { %v102_v47 = vrot.slane %v1933_v30, %v1928_v28  ;;  %v106_v48 = vrot.slane %v1933_v30, %v1930_v29  ;;  %v151_v49 = vrot.slane %v1936_v31, %v1910_v21  ;;  %v155_v50 = vrot.slane %v1936_v31, %v1912_v22 }
  0x33   :  { %v159_v51 = vrot.slane %v1936_v31, %v1914_v23  ;;  %v163_v52 = vrot.slane %v1936_v31, %v1919_v24  ;;  %vm352_vm6 = vcmp.eq.s32.totalorder %v1905_v19, 3  ;;  %vm353_vm7 = vcmp.eq.s32.totalorder %v1907_v20, 3 }
  0x34   :  { %vm456_vm8 = vcmp.eq.s32.totalorder %v1905_v19, 4  ;;  %vm457_vm9 = vcmp.eq.s32.totalorder %v1907_v20, 4  ;;  %vm560_vm10 = vcmp.eq.s32.totalorder %v1905_v19, 5  ;;  %vm561_vm11 = vcmp.eq.s32.totalorder %v1907_v20, 5 }
  0x35   :  { %1761 = vset.pattern.permute.xlu1 %v1854_v7  ;;  %1763 = vset.pattern.permute.xlu0 %v1855_v8  ;;  %vm664_vm12 = vcmp.eq.s32.totalorder %v1905_v19, 6  ;;  %vm665_vm13 = vcmp.eq.s32.totalorder %v1907_v20, 6  ;;  %v2137_v18 = vsel %vm561_vm11, 1, %v5236_v1  ;;  %vm768_vm14 = vcmp.eq.s32.totalorder %v1905_v19, 7 }
  0x36   :  { %749 = vperm.xlu1 %1761, %v38_v2   ;;  %957 = vperm.xlu0 %1763, %v38_v2   ;;  %5342 = vst [vmem:[#allocation11_spill] sm:$0xff] %v2137_v18  ;;  %v2140_v7 = vsel %vm664_vm12, 1, %v5236_v1  ;;  %vm769_vm15 = vcmp.eq.s32.totalorder %v1907_v20, 7  ;;  %vm872_vm0 = vcmp.eq.s32.totalorder %v1905_v19, 8  ;;  %vm873_vm1 = vcmp.eq.s32.totalorder %v1907_v20, 8 }
  0x37   :  { %5343 = vst [vmem:[#allocation12_spill] sm:$0xff] %v2140_v7  ;;  %v2204_v8 = vsel %vm768_vm14, 1, %v5236_v1  ;;  %v2223_v17 = vsel %vm873_vm1, 1, %v5236_v1  ;;  %vm976_vm2 = vcmp.eq.s32.totalorder %v1905_v19, 9  ;;  %vm977_vm3 = vcmp.eq.s32.totalorder %v1907_v20, 9 }
  0x38   :  { %5345 = vst [vmem:[#allocation14_spill] sm:$0xff] %v2204_v8  ;;  %5348 = vst [vmem:[#allocation17_spill] sm:$0xff] %v2223_v17  ;;  %vm1080_vm4 = vcmp.eq.s32.totalorder %v1905_v19, 10  ;;  %vm1081_vm5 = vcmp.eq.s32.totalorder %v1907_v20, 10  ;;  %v2284_v4 = vsel %vm976_vm2, 1, %v5236_v1  ;;  %v2297_v5 = vsel %vm977_vm3, 1, %v5236_v1 }
  0x39   :  { %5349 = vst [vmem:[#allocation18_spill] sm:$0xff] %v2284_v4  ;;  %5350 = vst [vmem:[#allocation19_spill] sm:$0xff] %v2297_v5  ;;  %v2300_v61 = vsel %vm1080_vm4, 1, %v5236_v1  ;;  %vm2419_vm11 = vcmp.eq.s32.totalorder %v50_v34, 1  ;;  %vm2426_vm12 = vcmp.eq.s32.totalorder %v54_v35, 1  ;;  %vm2448_vm14 = vcmp.eq.s32.totalorder %v62_v37, 1 }
  0x3a   :  { %1762 = vset.pattern.permute.xlu1 %v1856_v9  ;;  %1766 = vset.pattern.permute.xlu0 %v1857_v10  ;;  %v2217_v9 = vsel %vm769_vm15, 1, %v5236_v1  ;;  %5351 = vst [vmem:[#allocation20_spill] sm:$0xff] %v2300_v61  ;;  %v2303_v10 = vsel %vm1081_vm5, 1, %v5236_v1  ;;  %vm2455_vm15 = vcmp.eq.s32.totalorder %v66_v38, 1  ;;  %vm2469_vm1 = vcmp.eq.s32.totalorder %v74_v40, 1 }
  0x3b   :  { %853 = vperm.xlu1 %1762, %v38_v2   ;;  %1269 = vperm.xlu0 %1766, %v38_v2   ;;  %5346 = vst [vmem:[#allocation15_spill] sm:$0xff] %v2217_v9  ;;  %5352 = vst [vmem:[#allocation21_spill] sm:$0xff] %v2303_v10  ;;  %vm2483_vm3 = vcmp.eq.s32.totalorder %v78_v41, 1  ;;  %vm2490_vm4 = vcmp.eq.s32.totalorder %v82_v42, 1  ;;  %vm2497_vm5 = vcmp.eq.s32.totalorder %v86_v43, 1  ;;  %v5379_v41 = vmov 0 }
  0x3c   :  { %v5383_v42 = vmov 0  ;;  %v5385_v35 = vmov 0  ;;  %vm2540_vm2 = vcmp.eq.s32.totalorder %v106_v48, 1  ;;  %v5391_v30 = vmov 0 }
  0x3d   :  { %v5393_v48 = vmov 0  ;;  %v5400_v55 = vmov 0  ;;  %v5405_v43 = vrot.slane %v1936_v31, %v1928_v28  ;;  %v5406_v38 = vmov 0 }
  0x3e   :  { %v5409_v60 = vmov 0  ;;  %v5418_v54 = vmov 0  ;;  %v5430_v10 = vrot.slane %v1939_v32, %v1921_v25  ;;  %v5434_v61 = vmov 0 }
  0x3f   :  { %1764 = vset.pattern.permute.xlu1 %v1858_v11  ;;  %1769 = vset.pattern.permute.xlu0 %v1859_v12  ;;  %v2060_v11 = vsel %vm456_vm8, 1, %v5236_v1  ;;  %v2124_v12 = vsel %vm560_vm10, 1, %v5236_v1  ;;  %vm1288_vm8 = vcmp.eq.s32.totalorder %v1905_v19, 12  ;;  %vm2412_vm10 = vcmp.eq.s32.totalorder %v46_v33, 1 }
  0x40   :  { %1061 = vperm.xlu1 %1764, %v38_v2   ;;  %1581 = vperm.xlu0 %1769, %v38_v2   ;;  %v2380_v56 = vsel %vm1288_vm8, 1, %v5236_v1  ;;  %vm2526_vm8 = vcmp.eq.s32.totalorder %v98_v46, 1  ;;  %v5403_v46 = vmov 0  ;;  %v5452_v4 = vmov 0 }
  0x41   :  { %5355 = vst [vmem:[#allocation24_spill] sm:$0xff] %v2380_v56  ;;  %v5384_v42 = vsel %vm2526_vm8, 4294967295, %v5383_v42  ;;  %vm2566_vm8 = vcmp.eq.s32.totalorder %v159_v51, 1  ;;  %v5411_v56 = vrot.slane %v1939_v32, %v1910_v21  ;;  %v5454_v9 = vrot.slane %v1996_v58, %v1921_v25 }
  0x42   :  { %v5394_v48 = vsel %vm2566_vm8, 4294967295, %v5393_v48  ;;  %v5457_v8 = vrot.slane %v1996_v58, %v1923_v26  ;;  %v5461_v17 = vmov 0  ;;  %v5466_v7 = vrot.slane %v2015_v3, %v1910_v21 }
  0x43   :  { %v5485_v53 = vrot.slane %v2015_v3, %v1923_v26  ;;  %v5486_v59 = vmov 0  ;;  %v5489_v0 = vrot.slane %v2015_v3, %v1928_v28  ;;  %v5490_v33 = vmov 0 }
  0x44   :  { %1765 = vset.pattern.permute.xlu1 %v1860_v13  ;;  %1771 = vset.pattern.permute.xlu0 %v1861_v14  ;;  %v2143_v13 = vsel %vm665_vm13, 1, %v5236_v1  ;;  %vm2433_vm13 = vcmp.eq.s32.totalorder %v58_v36, 1  ;;  %v5502_v34 = vmov 0  ;;  %v5506_v37 = vmov 0 }
  0x45   :  { %1165 = vperm.xlu1 %1765, %v38_v2   ;;  %5344 = vst [vmem:[#allocation13_spill] sm:$0xff] %v2143_v13  ;;  %v5473_v13 = vrot.slane %v2015_v3, %v1914_v23 }
  0x49   :  { %1767 = vset.pattern.permute.xlu1 %v1862_v15  ;;  %v2044_v15 = vsel %vm352_vm6, 1, %v5236_v1  ;;  %vm1184_vm6 = vcmp.eq.s32.totalorder %v1905_v19, 11 }
  0x4a   :  { %1373 = vperm.xlu1 %1767, %v38_v2   ;;  %v2364_v62 = vsel %vm1184_vm6, 1, %v5236_v1  ;;  %vm2504_vm6 = vcmp.eq.s32.totalorder %v90_v44, 1  ;;  %v5381_v44 = vmov 0  ;;  %v5501_v36 = vrot.slane %v2044_v15, %v1912_v22 }
  0x4b   :  { %5353 = vst [vmem:[#allocation22_spill] sm:$0xff] %v2364_v62  ;;  %v5380_v41 = vsel %vm2504_vm6, 4294967295, %v5379_v41  ;;  %vm2573_vm6 = vcmp.eq.s32.totalorder %v163_v52, 1  ;;  %v5399_v52 = vrot.slane %v1936_v31, %v1921_v25  ;;  %v5505_v57 = vrot.slane %v2044_v15, %v1914_v23 }
  0x4c   :  { %v5517_v27 = vrot.slane %v2044_v15, %v1923_v26  ;;  %v5521_v40 = vrot.slane %v2044_v15, %v1928_v28 }
  0x4d   :  { %vm2591_vm8 = vcmp.eq.s32.totalorder %v5399_v52, 1  ;;  %v5408_v52 = vrot.slane %v1936_v31, %v1930_v29 }
  0x4e   :  { %1768 = vset.pattern.permute.xlu1 %v1863_v16  ;;  %v2063_v16 = vsel %vm457_vm9, 1, %v5236_v1  ;;  %vm1289_vm9 = vcmp.eq.s32.totalorder %v1907_v20, 12  ;;  %v5401_v55 = vsel %vm2591_vm8, 4294967295, %v5400_v55 }
  0x4f   :  { %1477 = vperm.xlu1 %1768, %v38_v2   ;;  %v2383_v6 = vsel %vm1289_vm9, 1, %v5236_v1  ;;  %vm2533_vm9 = vcmp.eq.s32.totalorder %v102_v47, 1 }
  0x50   :  { %5356 = vst [vmem:[#allocation25_spill] sm:$0xff] %v2383_v6  ;;  %v5386_v35 = vsel %vm2533_vm9, 4294967295, %v5385_v35  ;;  %vm2552_vm9 = vcmp.eq.s32.totalorder %v151_v49, 1  ;;  %v5395_v49 = vmov 0  ;;  %v5433_v6 = vrot.slane %v1939_v32, %v1923_v26 }
  0x51   :  { %v5396_v49 = vsel %vm2573_vm6, 4294967295, %v5395_v49 }
  0x53   :  { %1770 = vset.pattern.permute.xlu1 %v1861_v14  ;;  %v2057_v14 = vsel %vm353_vm7, 1, %v5236_v1  ;;  %vm1185_vm7 = vcmp.eq.s32.totalorder %v1907_v20, 11 }
  0x54   :  { %1685 = vperm.xlu1 %1770, %v38_v2   ;;  %v2220_v2 = vsel %vm872_vm0, 1, %v5236_v1  ;;  %v2377_v63 = vsel %vm1185_vm7, 1, %v5236_v1  ;;  %vm2462_vm0 = vcmp.eq.s32.totalorder %v70_v39, 1  ;;  %vm2519_vm7 = vcmp.eq.s32.totalorder %v94_v45, 1 }
  0x55   :  { %5347 = vst [vmem:[#allocation16_spill] sm:$0xff] %v2220_v2  ;;  %5354 = vst [vmem:[#allocation23_spill] sm:$0xff] %v2377_v63  ;;  %v5382_v44 = vsel %vm2519_vm7, 4294967295, %v5381_v44  ;;  %v5387_v45 = vmov 0  ;;  %vm5397_vm7 = vcmp.eq.s32.totalorder %v1905_v19, 13  ;;  %v5423_v63 = vmov 0  }
  0x56   :  { %v5388_v45 = vsel %vm2540_vm2, 4294967295, %v5387_v45  ;;  %vm2559_vm2 = vcmp.eq.s32.totalorder %v155_v50, 1  ;;  %v2586_v51 = vsel %vm5397_vm7, 1, %v5236_v1  ;;  %v5402_v50 = vrot.slane %v1936_v31, %v1923_v26 }
  0x57   :  { %v5392_v30 = vsel %vm2559_vm2, 4294967295, %v5391_v30  ;;  %5398 = vst [vmem:[#allocation26_spill] sm:$0xff] %v2586_v51  ;;  %vm2605_vm2 = vcmp.eq.s32.totalorder %v5405_v43, 1  ;;  %vm2612_vm7 = vcmp.eq.s32.totalorder %v5408_v52, 1  ;;  %v5412_v31 = vmov 0 }
  0x58   :  { %vm2598_vm6 = vcmp.eq.s32.totalorder %v5402_v50, 1  ;;  %v5407_v38 = vsel %vm2605_vm2, 4294967295, %v5406_v38  ;;  %v5410_v60 = vsel %vm2612_vm7, 4294967295, %v5409_v60  ;;  %vm2627_vm2 = vcmp.eq.s32.totalorder %v5411_v56, 1 }
  0x59   :  { %v5404_v46 = vsel %vm2598_vm6, 4294967295, %v5403_v46  ;;  %v5413_v31 = vsel %vm2627_vm2, 4294967295, %v5412_v31  ;;  %v5414_v52 = vrot.slane %v1939_v32, %v1912_v22  ;;  %v5415_v50 = vmov 0 }
  0x5a   :  { %v5417_v1 = vrot.slane %v1939_v32, %v1914_v23  ;;  %v5420_v56 = vrot.slane %v1939_v32, %v1919_v24  ;;  %v5421_v43 = vmov 0  ;;  %vm5426_vm2 = vcmp.eq.s32.totalorder %v1905_v19, 14 }
  0x5b   :  { %vm2634_vm7 = vcmp.eq.s32.totalorder %v5414_v52, 1  ;;  %v5431_v52 = vmov 0  ;;  %v5436_v19 = vrot.slane %v1939_v32, %v1928_v28  ;;  %v5460_v2 = vrot.slane %v1996_v58, %v1928_v28 }
  0x5c   :  { %v5416_v50 = vsel %vm2634_vm7, 4294967295, %v5415_v50  ;;  %vm2641_vm6 = vcmp.eq.s32.totalorder %v5417_v1, 1  ;;  %vm2648_vm8 = vcmp.eq.s32.totalorder %v5420_v56, 1  ;;  %vm5424_vm7 = vcmp.eq.s32.totalorder %v1907_v20, 13 }
  0x5d   :  { %v5419_v54 = vsel %vm2641_vm6, 4294967295, %v5418_v54  ;;  %v5422_v43 = vsel %vm2648_vm8, 4294967295, %v5421_v43  ;;  %v2657_v62 = vsel %vm5424_vm7, 1, %v5423_v63  ;;  %v2662_v1 = vsel %vm5426_vm2, 1, %v5423_v63 }
  0x5e   :  { %5425 = vst [vmem:[#allocation27_spill] sm:$0xff] %v2657_v62  ;;  %5427 = vst [vmem:[#allocation28_spill] sm:$0xff] %v2662_v1  ;;  %vm5428_vm6 = vcmp.eq.s32.totalorder %v1907_v20, 14  ;;  %vm2672_vm8 = vcmp.eq.s32.totalorder %v5430_v10, 1  ;;  %vm2679_vm7 = vcmp.eq.s32.totalorder %v5433_v6, 1  ;;  %vm2686_vm2 = vcmp.eq.s32.totalorder %v5436_v19, 1 }
  0x5f   :  { %v2667_v56 = vsel %vm5428_vm6, 1, %v5423_v63  ;;  %v5432_v52 = vsel %vm2672_vm8, 4294967295, %v5431_v52  ;;  %v5435_v61 = vsel %vm2679_vm7, 4294967295, %v5434_v61  ;;  %v5437_v20 = vmov 0 }
  0x60   :  { %5429 = vst [vmem:[#allocation29_spill] sm:$0xff] %v2667_v56  ;;  %v5438_v20 = vsel %vm2686_vm2, 4294967295, %v5437_v20  ;;  %v5439_v10 = vrot.slane %v1939_v32, %v1930_v29  ;;  %v5440_v63 = vmov 0  ;;  %v5442_v32 = vrot.slane %v1996_v58, %v1910_v21 }
  0x61   :  { %v5445_v6 = vrot.slane %v1996_v58, %v1912_v22  ;;  %v5446_v56 = vmov 0  ;;  %v5448_v1 = vrot.slane %v1996_v58, %v1914_v23  ;;  %v5449_v19 = vmov 0 }
  0x62   :  { %vm2693_vm6 = vcmp.eq.s32.totalorder %v5439_v10, 1  ;;  %vm2710_vm2 = vcmp.eq.s32.totalorder %v5442_v32, 1  ;;  %v5443_v10 = vmov 0  ;;  %v5451_v32 = vrot.slane %v1996_v58, %v1919_v24 }
  0x63   :  { %v5441_v63 = vsel %vm2693_vm6, 4294967295, %v5440_v63  ;;  %v5444_v10 = vsel %vm2710_vm2, 4294967295, %v5443_v10  ;;  %vm2717_vm6 = vcmp.eq.s32.totalorder %v5445_v6, 1  ;;  %vm2724_vm7 = vcmp.eq.s32.totalorder %v5448_v1, 1 }
  0x64   :  { %v5447_v56 = vsel %vm2717_vm6, 4294967295, %v5446_v56  ;;  %v5450_v19 = vsel %vm2724_vm7, 4294967295, %v5449_v19  ;;  %vm2731_vm8 = vcmp.eq.s32.totalorder %v5451_v32, 1  ;;  %vm2746_vm7 = vcmp.eq.s32.totalorder %v5454_v9, 1 }
  0x65   :  { %v5453_v4 = vsel %vm2731_vm8, 4294967295, %v5452_v4  ;;  %v5455_v32 = vmov 0  ;;  %vm2753_vm8 = vcmp.eq.s32.totalorder %v5457_v8, 1  ;;  %v5458_v6 = vmov 0 }
  0x66   :  { %v5456_v32 = vsel %vm2746_vm7, 4294967295, %v5455_v32  ;;  %v5459_v6 = vsel %vm2753_vm8, 4294967295, %v5458_v6  ;;  %vm2760_vm6 = vcmp.eq.s32.totalorder %v5460_v2, 1  ;;  %v5463_v9 = vrot.slane %v1996_v58, %v1930_v29 }
  0x67   :  { %v5462_v17 = vsel %vm2760_vm6, 4294967295, %v5461_v17  ;;  %v5464_v1 = vmov 0  ;;  %vm2782_vm6 = vcmp.eq.s32.totalorder %v5466_v7, 1  ;;  %v5470_v8 = vmov 0 }
  0x68   :  { %vm2767_vm2 = vcmp.eq.s32.totalorder %v5463_v9, 1  ;;  %v5469_v9 = vrot.slane %v2015_v3, %v1912_v22  ;;  %vm2796_vm8 = vcmp.eq.s32.totalorder %v5473_v13, 1  ;;  %v5474_v51 = vmov 0 }
  0x69   :  { %v5465_v1 = vsel %vm2767_vm2, 4294967295, %v5464_v1  ;;  %v5475_v51 = vsel %vm2796_vm8, 4294967295, %v5474_v51  ;;  %v5477_v7 = vrot.slane %v2015_v3, %v1919_v24  ;;  %v5478_v2 = vmov 0 }
  0x6a   :  { %vm2789_vm2 = vcmp.eq.s32.totalorder %v5469_v9, 1  ;;  %5476 = vst [vmem:[#allocation31_spill] sm:$0xff] %v5475_v51  ;;  %v5482_v13 = vmov 0  ;;  %v5494_v62 = vmov 0  ;;  %v5518_v39 = vmov 0 }
  0x6b   :  { %v5471_v8 = vsel %vm2789_vm2, 4294967295, %v5470_v8  ;;  %vm2803_vm7 = vcmp.eq.s32.totalorder %v5477_v7, 1  ;;  %v5553_v47 = vrot.slane %v2057_v14, %v1923_v26 }
  0x6c   :  { %5472 = vst [vmem:[#allocation30_spill] sm:$0xff] %v5471_v8  ;;  %v5479_v2 = vsel %vm2803_vm7, 4294967295, %v5478_v2  ;;  %v5481_v8 = vrot.slane %v2015_v3, %v1921_v25 }
  0x6d   :  { %5480 = vst [vmem:[#allocation32_spill] sm:$0xff] %v5479_v2  ;;  %v5525_v2 = vmov 0 }
  0x6e   :  { %vm2830_vm7 = vcmp.eq.s32.totalorder %v5481_v8, 1  ;;  %v5493_v8 = vrot.slane %v2015_v3, %v1930_v29 }
  0x6f   :  { %v5483_v13 = vsel %vm2830_vm7, 4294967295, %v5482_v13 }
  0x70   :  { %5484 = vst [vmem:[#allocation33_spill] sm:$0xff] %v5483_v13 }
  0xa6   :  { %v2705_v5 = vpop.permute.xlu0 %125  ;;  %v2855_v13 = vpop.permute.xlu1 %333 }
  0xa7   :  { %v128_v51 = vsel %vm2412_vm10, %v2705_v5, 0.0  ;;  %v129_v7 = vsel %vm2419_vm11, %v2705_v5, 0.0  ;;  %v130_v9 = vsel %vm2426_vm12, %v2705_v5, 0.0  ;;  %v131_v18 = vsel %vm2433_vm13, %v2705_v5, 0.0 }
  0xa8   :  { %vm2837_vm10 = vcmp.eq.s32.totalorder %v5485_v53, 1  ;;  %vm2844_vm11 = vcmp.eq.s32.totalorder %v5489_v0, 1  ;;  %vm2851_vm12 = vcmp.eq.s32.totalorder %v5493_v8, 1  ;;  %v132_v53 = vsel %vm2448_vm14, %v2705_v5, 0.0 }
  0xa9   :  { %v5487_v59 = vsel %vm2837_vm10, 4294967295, %v5486_v59  ;;  %v5491_v33 = vsel %vm2844_vm11, 4294967295, %v5490_v33  ;;  %v5495_v62 = vsel %vm2851_vm12, 4294967295, %v5494_v62  ;;  %v133_v0 = vsel %vm2455_vm15, %v2705_v5, 0.0 }
  0xaa   :  { %5488 = vst [vmem:[#allocation34_spill] sm:$0xff] %v5487_v59  ;;  %5492 = vst [vmem:[#allocation35_spill] sm:$0xff] %v5491_v33  ;;  %v134_v33 = vsel %vm2462_vm0, %v2705_v5, 0.0  ;;  %v135_v3 = vsel %vm2469_vm1, %v2705_v5, 0.0  ;;  %v5497_v8 = vrot.slane %v2044_v15, %v1910_v21  ;;  %vm2879_vm14 = vcmp.eq.s32.totalorder %v5501_v36, 1 }
  0xab   :  { %5496 = vst [vmem:[#allocation36_spill] sm:$0xff] %v5495_v62  ;;  %v5498_v62 = vmov 0  ;;  %v5503_v34 = vsel %vm2879_vm14, 4294967295, %v5502_v34  ;;  %vm2886_vm15 = vcmp.eq.s32.totalorder %v5505_v57, 1  ;;  %v5510_v59 = vmov 0 }
  0xac   :  { %vm2872_vm13 = vcmp.eq.s32.totalorder %v5497_v8, 1  ;;  %5504 = vst [vmem:[#allocation38_spill] sm:$0xff] %v5503_v34  ;;  %v5507_v37 = vsel %vm2886_vm15, 4294967295, %v5506_v37  ;;  %v5509_v8 = vrot.slane %v2044_v15, %v1919_v24  ;;  %v136_v36 = vsel %vm2483_vm3, %v2705_v5, 0.0 }
  0xad   :  { %v5499_v62 = vsel %vm2872_vm13, 4294967295, %v5498_v62  ;;  %5508 = vst [vmem:[#allocation39_spill] sm:$0xff] %v5507_v37  ;;  %v137_v34 = vsel %vm2490_vm4, %v2705_v5, 0.0  ;;  %v138_v57 = vsel %vm2497_vm5, %v2705_v5, 0.0  ;;  %vm5513_vm1 = vnez %v5380_v41 }
  0xae   :  { %5500 = vst [vmem:[#allocation37_spill] sm:$0xff] %v5499_v62  ;;  %vm2893_vm0 = vcmp.eq.s32.totalorder %v5509_v8, 1  ;;  %v139_v37 = vsel %vm5513_vm1, %v2705_v5, 0.0  ;;  %v230_v8 = vpop.permute.xlu0 %229  ;;  %v5515_v62 = vmov 0  ;;  %vm2919_vm3 = vcmp.eq.s32.totalorder %v5517_v27, 1 }
  0xaf   :  { %v5511_v59 = vsel %vm2893_vm0, 4294967295, %v5510_v59  ;;  %v5519_v39 = vsel %vm2919_vm3, 4294967295, %v5518_v39  ;;  %vm2926_vm4 = vcmp.eq.s32.totalorder %v5521_v40, 1  ;;  %v5522_v41 = vmov 0 }
  0xb0   :  { %5512 = vst [vmem:[#allocation40_spill] sm:$0xff] %v5511_v59  ;;  %v5514_v59 = vrot.slane %v2044_v15, %v1921_v25  ;;  %5520 = vst [vmem:[#allocation41_spill] sm:$0xff] %v5519_v39  ;;  %v5523_v41 = vsel %vm2926_vm4, 4294967295, %v5522_v41  ;;  %vm5528_vm1 = vnez %v5382_v44  ;;  %vm5529_vm3 = vnez %v5384_v42 }
  0xb1   :  { %v140_v27 = vsel %vm5528_vm1, %v2705_v5, 0.0  ;;  %v141_v39 = vsel %vm5529_vm3, %v2705_v5, 0.0  ;;  %vm5531_vm4 = vnez %v5388_v45  ;;  %v5535_v44 = vrot.slane %v2057_v14, %v1912_v22 }
  0xb2   :  { %vm2912_vm0 = vcmp.eq.s32.totalorder %v5514_v59, 1  ;;  %v5524_v59 = vrot.slane %v2044_v15, %v1930_v29  ;;  %v143_v15 = vsel %vm5531_vm4, %v2705_v5, 0.0  ;;  %v5536_v42 = vmov 0 }
  0xb3   :  { %v5516_v62 = vsel %vm2912_vm0, 4294967295, %v5515_v62  ;;  %vm5530_vm0 = vnez %v5386_v35  ;;  %vm2959_vm1 = vcmp.eq.s32.totalorder %v5535_v44, 1  ;;  %v5539_v35 = vrot.slane %v2057_v14, %v1914_v23 }
  0xb4   :  { %vm2933_vm5 = vcmp.eq.s32.totalorder %v5524_v59, 1  ;;  %v142_v40 = vsel %vm5530_vm0, %v2705_v5, 0.0  ;;  %v5532_v59 = vrot.slane %v2057_v14, %v1910_v21  ;;  %v5537_v42 = vsel %vm2959_vm1, 4294967295, %v5536_v42 }
  0xb5   :  { %v5526_v2 = vsel %vm2933_vm5, 4294967295, %v5525_v2  ;;  %5538 = vst [vmem:[#allocation43_spill] sm:$0xff] %v5537_v42  ;;  %vm2966_vm0 = vcmp.eq.s32.totalorder %v5539_v35, 1  ;;  %v5540_v45 = vmov 0  ;;  %v5543_v5 = vrot.slane %v2057_v14, %v1919_v24 }
  0xb6   :  { %5527 = vst [vmem:[#allocation42_spill] sm:$0xff] %v5526_v2  ;;  %vm2952_vm5 = vcmp.eq.s32.totalorder %v5532_v59, 1  ;;  %v5541_v45 = vsel %vm2966_vm0, 4294967295, %v5540_v45  ;;  %v5544_v59 = vmov 0  ;;  %v2979_v44 = vsel %vm2552_vm9, %v230_v8, %v128_v51 }
  0xb7   :  { %5542 = vst [vmem:[#allocation44_spill] sm:$0xff] %v5541_v45  ;;  %vm2973_vm3 = vcmp.eq.s32.totalorder %v5543_v5, 1  ;;  %vm5547_vm4 = vnez %v5392_v30  ;;  %vm5548_vm1 = vnez %v5394_v48  ;;  %vm5549_vm0 = vnez %v5396_v49 }
  0xb8   :  { %v5545_v59 = vsel %vm2973_vm3, 4294967295, %v5544_v59  ;;  %v2983_v42 = vsel %vm5547_vm4, %v230_v8, %v129_v7  ;;  %v2987_v35 = vsel %vm5548_vm1, %v230_v8, %v130_v9  ;;  %v2991_v45 = vsel %vm5549_vm0, %v230_v8, %v131_v18 }
  0xb9   :  { %5546 = vst [vmem:[#allocation45_spill] sm:$0xff] %v5545_v59  ;;  %v5550_v5 = vrot.slane %v2057_v14, %v1921_v25  ;;  %v5551_v59 = vmov 0  ;;  %vm3003_vm9 = vcmp.eq.s32.totalorder %v5553_v47, 1  ;;  %v5554_v30 = vmov 0 }
  0xba   :  { %v5555_v30 = vsel %vm3003_vm9, 4294967295, %v5554_v30  ;;  %v5556_v48 = vrot.slane %v2057_v14, %v1928_v28  ;;  %v5557_v18 = vmov 0  ;;  %v5559_v49 = vrot.slane %v2057_v14, %v1930_v29 }
  0xbb   :  { %vm2996_vm3 = vcmp.eq.s32.totalorder %v5550_v5, 1  ;;  %v5560_v51 = vmov 0  ;;  %vm5562_vm4 = vnez %v5401_v55  ;;  %vm5563_vm9 = vnez %v5404_v46 }
  0xbc   :  { %v5552_v59 = vsel %vm2996_vm3, 4294967295, %v5551_v59  ;;  %vm3010_vm1 = vcmp.eq.s32.totalorder %v5556_v48, 1  ;;  %vm3017_vm0 = vcmp.eq.s32.totalorder %v5559_v49, 1  ;;  %v3023_v9 = vsel %vm5562_vm4, %v230_v8, %v132_v53 }
  0xbd   :  { %v5558_v18 = vsel %vm3010_vm1, 4294967295, %v5557_v18  ;;  %v5561_v51 = vsel %vm3017_vm0, 4294967295, %v5560_v51  ;;  %v3027_v7 = vsel %vm5563_vm9, %v230_v8, %v133_v0  ;;  %vm5564_vm3 = vnez %v5407_v38 }
  0xbe   :  { %v3031_v5 = vsel %vm5564_vm3, %v230_v8, %v134_v33  ;;  %vm5565_vm1 = vnez %v5410_v60  ;;  %v5566_v14 = vrot.slane %v2060_v11, %v1910_v21  ;;  %v5567_v48 = vmov 0 }
  0xbf   :  { %v3035_v47 = vsel %vm5565_vm1, %v230_v8, %v135_v3  ;;  %v5569_v55 = vrot.slane %v2060_v11, %v1912_v22  ;;  %v5570_v46 = vmov 0  ;;  %v5572_v38 = vrot.slane %v2060_v11, %v1914_v23 }
  0xc0   :  { %vm3040_vm0 = vcmp.eq.s32.totalorder %v5566_v14, 1  ;;  %v5573_v60 = vmov 0  ;;  %v5575_v33 = vrot.slane %v2060_v11, %v1919_v24  ;;  %v5576_v53 = vmov 0 }
  0xc1   :  { %v5568_v48 = vsel %vm3040_vm0, 4294967295, %v5567_v48  ;;  %vm3047_vm9 = vcmp.eq.s32.totalorder %v5569_v55, 1  ;;  %vm3054_vm3 = vcmp.eq.s32.totalorder %v5572_v38, 1  ;;  %vm5578_vm4 = vnez %v5413_v31 }
  0xc2   :  { %v5571_v46 = vsel %vm3047_vm9, 4294967295, %v5570_v46  ;;  %v5574_v60 = vsel %vm3054_vm3, 4294967295, %v5573_v60  ;;  %vm3061_vm1 = vcmp.eq.s32.totalorder %v5575_v33, 1  ;;  %v3067_v0 = vsel %vm5578_vm4, %v230_v8, %v136_v36  ;;  %v3109_v36 = vpop.permute.xlu1 %437 }
  0xc3   :  { %v5577_v53 = vsel %vm3061_vm1, 4294967295, %v5576_v53  ;;  %vm5579_vm9 = vnez %v5416_v50  ;;  %vm5580_vm0 = vnez %v5419_v54  ;;  %vm5581_vm3 = vnez %v5422_v43 }
  0xc4   :  { %v3071_v3 = vsel %vm5579_vm9, %v230_v8, %v137_v34  ;;  %v3075_v49 = vsel %vm5580_vm0, %v230_v8, %v138_v57  ;;  %v3079_v14 = vsel %vm5581_vm3, %v230_v8, %v139_v37  ;;  %v5582_v55 = vrot.slane %v2060_v11, %v1921_v25 }
  0xc5   :  { %v5583_v38 = vmov 0  ;;  %v5585_v50 = vrot.slane %v2060_v11, %v1923_v26  ;;  %v5586_v31 = vmov 0  ;;  %v5588_v54 = vrot.slane %v2060_v11, %v1928_v28 }
  0xc6   :  { %vm3084_vm1 = vcmp.eq.s32.totalorder %v5582_v55, 1  ;;  %v5589_v43 = vmov 0  ;;  %v5591_v34 = vrot.slane %v2060_v11, %v1930_v29  ;;  %v5592_v37 = vmov 0 }
  0xc7   :  { %v5584_v38 = vsel %vm3084_vm1, 4294967295, %v5583_v38  ;;  %vm3091_vm9 = vcmp.eq.s32.totalorder %v5585_v50, 1  ;;  %vm3098_vm0 = vcmp.eq.s32.totalorder %v5588_v54, 1  ;;  %vm5594_vm4 = vnez %v5432_v52 }
  0xc8   :  { %v5587_v31 = vsel %vm3091_vm9, 4294967295, %v5586_v31  ;;  %v5590_v43 = vsel %vm3098_vm0, 4294967295, %v5589_v43  ;;  %vm3105_vm3 = vcmp.eq.s32.totalorder %v5591_v34, 1  ;;  %v3113_v57 = vsel %vm5594_vm4, %v230_v8, %v140_v27 }
  0xc9   :  { %v5593_v37 = vsel %vm3105_vm3, 4294967295, %v5592_v37  ;;  %vm5595_vm9 = vnez %v5435_v61  ;;  %vm5596_vm1 = vnez %v5438_v20  ;;  %vm5597_vm0 = vnez %v5441_v63 }
  0xca   :  { %v3117_v33 = vsel %vm5595_vm9, %v230_v8, %v141_v39  ;;  %v3121_v55 = vsel %vm5596_vm1, %v230_v8, %v142_v40  ;;  %v3125_v11 = vsel %vm5597_vm0, %v230_v8, %v143_v15  ;;  %v5598_v50 = vrot.slane %v2063_v16, %v1910_v21 }
  0xcb   :  { %v5599_v54 = vmov 0  ;;  %v5601_v61 = vrot.slane %v2063_v16, %v1912_v22  ;;  %v5602_v52 = vmov 0  ;;  %v5604_v20 = vrot.slane %v2063_v16, %v1914_v23 }
  0xcc   :  { %vm3130_vm3 = vcmp.eq.s32.totalorder %v5598_v50, 1  ;;  %v5605_v63 = vmov 0  ;;  %v5607_v8 = vrot.slane %v2063_v16, %v1919_v24  ;;  %v5608_v39 = vmov 0 }
  0xcd   :  { %v5600_v54 = vsel %vm3130_vm3, 4294967295, %v5599_v54  ;;  %vm3137_vm9 = vcmp.eq.s32.totalorder %v5601_v61, 1  ;;  %vm3144_vm1 = vcmp.eq.s32.totalorder %v5604_v20, 1  ;;  %vm5610_vm4 = vnez %v5444_v10 }
  0xce   :  { %v5603_v52 = vsel %vm3137_vm9, 4294967295, %v5602_v52  ;;  %v5606_v63 = vsel %vm3144_vm1, 4294967295, %v5605_v63  ;;  %vm3151_vm0 = vcmp.eq.s32.totalorder %v5607_v8, 1  ;;  %v336_v27 = vsel %vm5610_vm4, %v2855_v13, %v2979_v44 }
  0xcf   :  { %v5609_v39 = vsel %vm3151_vm0, 4294967295, %v5608_v39  ;;  %vm5611_vm9 = vnez %v5447_v56  ;;  %vm5612_vm1 = vnez %v5450_v19  ;;  %vm5613_vm3 = vnez %v5453_v4 }
  0xd0   :  { %v337_v40 = vsel %vm5611_vm9, %v2855_v13, %v2983_v42  ;;  %v338_v15 = vsel %vm5612_vm1, %v2855_v13, %v2987_v35  ;;  %v339_v34 = vsel %vm5613_vm3, %v2855_v13, %v2991_v45  ;;  %v5614_v50 = vrot.slane %v2063_v16, %v1921_v25 }
  0xd1   :  { %v5615_v10 = vmov 0  ;;  %v5617_v56 = vrot.slane %v2063_v16, %v1923_v26  ;;  %v5618_v42 = vmov 0  ;;  %v5620_v19 = vrot.slane %v2063_v16, %v1928_v28 }
  0xd2   :  { %vm3174_vm0 = vcmp.eq.s32.totalorder %v5614_v50, 1  ;;  %v5621_v4 = vmov 0  ;;  %v5623_v45 = vrot.slane %v2063_v16, %v1930_v29  ;;  %v5624_v44 = vmov 0 }
  0xd3   :  { %v5616_v10 = vsel %vm3174_vm0, 4294967295, %v5615_v10  ;;  %vm3181_vm9 = vcmp.eq.s32.totalorder %v5617_v56, 1  ;;  %vm3188_vm1 = vcmp.eq.s32.totalorder %v5620_v19, 1  ;;  %vm5626_vm4 = vnez %v5456_v32 }
  0xd4   :  { %v5619_v42 = vsel %vm3181_vm9, 4294967295, %v5618_v42  ;;  %v5622_v4 = vsel %vm3188_vm1, 4294967295, %v5621_v4  ;;  %vm3195_vm3 = vcmp.eq.s32.totalorder %v5623_v45, 1  ;;  %v340_v35 = vsel %vm5626_vm4, %v2855_v13, %v3023_v9 }
  0xd5   :  { %v5625_v44 = vsel %vm3195_vm3, 4294967295, %v5624_v44  ;;  %vm5627_vm9 = vnez %v5459_v6  ;;  %vm5628_vm1 = vnez %v5462_v17  ;;  %vm5629_vm0 = vnez %v5465_v1 }
  0xd6   :  { %v341_v61 = vsel %vm5627_vm9, %v2855_v13, %v3027_v7  ;;  %v342_v20 = vsel %vm5628_vm1, %v2855_v13, %v3031_v5  ;;  %v343_v16 = vsel %vm5629_vm0, %v2855_v13, %v3035_v47  ;;  %v5630_v8 = vrot.slane %v2124_v12, %v1910_v21 }
  0xd7   :  { %v5633_v6 = vrot.slane %v2124_v12, %v1912_v22  ;;  %v5636_v17 = vrot.slane %v2124_v12, %v1914_v23  ;;  %v5639_v7 = vrot.slane %v2124_v12, %v1919_v24  ;;  %v5640_v5 = vmov 0 }
  0xd8   :  { %vm3218_vm3 = vcmp.eq.s32.totalorder %v5630_v8, 1  ;;  %v344_v47 = vsel %vm2782_vm6, %v2855_v13, %v3067_v0  ;;  %v345_v56 = vsel %vm2789_vm2, %v2855_v13, %v3071_v3  ;;  %v346_v45 = vsel %vm2796_vm8, %v2855_v13, %v3075_v49  ;;  %v5644_v8 = vld [vmem:[#allocation32_spill] sm:$0xff] }
  0xd9   :  { %vm3225_vm9 = vcmp.eq.s32.totalorder %v5633_v6, 1  ;;  %vm3232_vm1 = vcmp.eq.s32.totalorder %v5636_v17, 1  ;;  %vm3239_vm0 = vcmp.eq.s32.totalorder %v5639_v7, 1  ;;  %vm5645_vm4 = vnez %v5644_v8 }
  0xda   :  { %v5641_v5 = vsel %vm3239_vm0, 4294967295, %v5640_v5  ;;  %v347_v6 = vsel %vm5645_vm4, %v2855_v13, %v3079_v14  ;;  %v5646_v17 = vrot.slane %v2124_v12, %v1921_v25  ;;  %v5649_v0 = vrot.slane %v2124_v12, %v1923_v26 }
  0xdb   :  { %v5650_v3 = vmov 0  ;;  %v5653_v49 = vrot.slane %v2124_v12, %v1928_v28  ;;  %v5654_v7 = vmov 0  ;;  %v5657_v14 = vrot.slane %v2124_v12, %v1930_v29 }
  0xdc   :  { %vm3262_vm0 = vcmp.eq.s32.totalorder %v5646_v17, 1  ;;  %vm3269_vm2 = vcmp.eq.s32.totalorder %v5649_v0, 1  ;;  %v5658_v50 = vmov 0  ;;  %v348_v8 = vsel %vm2830_vm7, %v2855_v13, %v3113_v57 }
  0xdd   :  { %v5651_v3 = vsel %vm3269_vm2, 4294967295, %v5650_v3  ;;  %vm3276_vm8 = vcmp.eq.s32.totalorder %v5653_v49, 1  ;;  %vm3283_vm6 = vcmp.eq.s32.totalorder %v5657_v14, 1  ;;  %v349_v0 = vsel %vm2837_vm10, %v2855_v13, %v3117_v33 }
  0xde   :  { %5652 = vst [vmem:[#allocation30_spill] sm:$0xff] %v5651_v3  ;;  %v5655_v7 = vsel %vm3276_vm8, 4294967295, %v5654_v7  ;;  %v5659_v50 = vsel %vm3283_vm6, 4294967295, %v5658_v50  ;;  %v351_v14 = vsel %vm2851_vm12, %v2855_v13, %v3125_v11  ;;  %v5670_v19 = vmov 0 }
  0xdf   :  { %5656 = vst [vmem:[#allocation31_spill] sm:$0xff] %v5655_v7  ;;  %5660 = vst [vmem:[#allocation32_spill] sm:$0xff] %v5659_v50  ;;  %v350_v7 = vsel %vm2844_vm11, %v2855_v13, %v3121_v55  ;;  %v5665_v50 = vld [vmem:[#allocation11_spill] sm:$0xff]  ;;  %v5674_v17 = vmov 0  ;;  %v3334_v49 = vsel %vm2872_vm13, %v3109_v36, %v336_v27  ;;  %v5686_v27 = vmov 0 }
  0xe0   :  { %v5666_v3 = vrot.slane %v5665_v50, %v1910_v21  ;;  %v5669_v33 = vrot.slane %v5665_v50, %v1912_v22  ;;  %v5673_v55 = vrot.slane %v5665_v50, %v1914_v23  ;;  %v5677_v13 = vrot.slane %v5665_v50, %v1919_v24 }
  0xe1   :  { %v5689_v12 = vmov 0  ;;  %v5830_v9 = vmov 0  ;;  %v5869_v11 = vmov 0 }
  0xe2   :  { %vm3306_vm4 = vcmp.eq.s32.totalorder %v5666_v3, 1  ;;  %vm3313_vm7 = vcmp.eq.s32.totalorder %v5669_v33, 1  ;;  %vm3320_vm10 = vcmp.eq.s32.totalorder %v5673_v55, 1  ;;  %vm3327_vm11 = vcmp.eq.s32.totalorder %v5677_v13, 1  ;;  %v5683_v13 = vld [vmem:[#allocation40_spill] sm:$0xff] }
  0xe3   :  { %v5671_v19 = vsel %vm3313_vm7, 4294967295, %v5670_v19  ;;  %v5675_v17 = vsel %vm3320_vm10, 4294967295, %v5674_v17  ;;  %v3339_v33 = vsel %vm2879_vm14, %v3109_v36, %v337_v40  ;;  %vm5684_vm12 = vnez %v5683_v13 }
  0xe4   :  { %5672 = vst [vmem:[#allocation33_spill] sm:$0xff] %v5671_v19  ;;  %5676 = vst [vmem:[#allocation34_spill] sm:$0xff] %v5675_v17  ;;  %v3344_v17 = vsel %vm2886_vm15, %v3109_v36, %v338_v15  ;;  %v3349_v19 = vsel %vm5684_vm12, %v3109_v36, %v339_v34  ;;  %v5685_v3 = vrot.slane %v5665_v50, %v1921_v25  ;;  %v5693_v34 = vmov 0 }
  0xe5   :  { %v5688_v40 = vrot.slane %v5665_v50, %v1923_v26  ;;  %v5692_v15 = vrot.slane %v5665_v50, %v1928_v28  ;;  %v5696_v55 = vrot.slane %v5665_v50, %v1930_v29  ;;  %v5697_v13 = vmov 0 }
  0xe6   :  { %vm3354_vm13 = vcmp.eq.s32.totalorder %v5685_v3, 1  ;;  %v3379_v3 = vpop.permute.xlu1 %541 }
  0xe7   :  { %v5687_v27 = vsel %vm3354_vm13, 4294967295, %v5686_v27  ;;  %vm3361_vm14 = vcmp.eq.s32.totalorder %v5688_v40, 1  ;;  %vm3368_vm15 = vcmp.eq.s32.totalorder %v5692_v15, 1  ;;  %vm3375_vm12 = vcmp.eq.s32.totalorder %v5696_v55, 1  ;;  %v5704_v55 = vld [vmem:[#allocation42_spill] sm:$0xff] }
  0xe8   :  { %v5690_v12 = vsel %vm3361_vm14, 4294967295, %v5689_v12  ;;  %v5694_v34 = vsel %vm3368_vm15, 4294967295, %v5693_v34  ;;  %v5698_v13 = vsel %vm3375_vm12, 4294967295, %v5697_v13  ;;  %vm5700_vm13 = vnez %v5516_v62 }
  0xe9   :  { %5691 = vst [vmem:[#allocation35_spill] sm:$0xff] %v5690_v12  ;;  %5695 = vst [vmem:[#allocation36_spill] sm:$0xff] %v5694_v34  ;;  %v3384_v40 = vsel %vm5700_vm13, %v3109_v36, %v340_v35  ;;  %v5701_v12 = vld [vmem:[#allocation41_spill] sm:$0xff]  ;;  %vm5703_vm15 = vnez %v5523_v41  ;;  %vm5705_vm12 = vnez %v5704_v55  ;;  %v5706_v34 = vld [vmem:[#allocation12_spill] sm:$0xff]  ;;  %v5708_v35 = vmov 0 }
  0xea   :  { %5699 = vst [vmem:[#allocation11_spill] sm:$0xff] %v5698_v13  ;;  %vm5702_vm14 = vnez %v5701_v12  ;;  %v3394_v50 = vsel %vm5703_vm15, %v3109_v36, %v342_v20  ;;  %v3399_v13 = vsel %vm5705_vm12, %v3109_v36, %v343_v16  ;;  %v5707_v62 = vrot.slane %v5706_v34, %v1910_v21 }
  0xeb   :  { %v3389_v15 = vsel %vm5702_vm14, %v3109_v36, %v341_v61  ;;  %v5711_v61 = vrot.slane %v5706_v34, %v1912_v22  ;;  %v5712_v12 = vmov 0  ;;  %v5715_v41 = vrot.slane %v5706_v34, %v1914_v23 }
  0xec   :  { %vm3404_vm13 = vcmp.eq.s32.totalorder %v5707_v62, 1  ;;  %v5716_v20 = vmov 0  ;;  %v5719_v16 = vrot.slane %v5706_v34, %v1919_v24  ;;  %v5720_v55 = vmov 0 }
  0xed   :  { %v5709_v35 = vsel %vm3404_vm13, 4294967295, %v5708_v35  ;;  %vm3411_vm14 = vcmp.eq.s32.totalorder %v5711_v61, 1  ;;  %vm3418_vm15 = vcmp.eq.s32.totalorder %v5715_v41, 1  ;;  %v3432_v62 = vsel %vm2952_vm5, %v3109_v36, %v344_v47  ;;  %v5722_v61 = vld [vmem:[#allocation43_spill] sm:$0xff]  ;;  %v5724_v41 = vld [vmem:[#allocation44_spill] sm:$0xff] }
  0xee   :  { %5710 = vst [vmem:[#allocation37_spill] sm:$0xff] %v5709_v35  ;;  %v5713_v12 = vsel %vm3411_vm14, 4294967295, %v5712_v12  ;;  %v5717_v20 = vsel %vm3418_vm15, 4294967295, %v5716_v20  ;;  %vm3425_vm12 = vcmp.eq.s32.totalorder %v5719_v16, 1  ;;  %vm5723_vm14 = vnez %v5722_v61  ;;  %v5726_v16 = vld [vmem:[#allocation45_spill] sm:$0xff] }
  0xef   :  { %5714 = vst [vmem:[#allocation38_spill] sm:$0xff] %v5713_v12  ;;  %5718 = vst [vmem:[#allocation39_spill] sm:$0xff] %v5717_v20  ;;  %v5721_v55 = vsel %vm3425_vm12, 4294967295, %v5720_v55  ;;  %v3437_v12 = vsel %vm5723_vm14, %v3109_v36, %v345_v56  ;;  %vm5725_vm15 = vnez %v5724_v41  ;;  %vm5727_vm13 = vnez %v5726_v16 }
  0xf0   :  { %v3442_v20 = vsel %vm5725_vm15, %v3109_v36, %v346_v45  ;;  %v3447_v35 = vsel %vm5727_vm13, %v3109_v36, %v347_v6  ;;  %v5728_v2 = vrot.slane %v5706_v34, %v1921_v25  ;;  %v5729_v47 = vmov 0 }
  0xf1   :  { %v5731_v56 = vrot.slane %v5706_v34, %v1923_v26  ;;  %v5732_v61 = vmov 0  ;;  %v5734_v45 = vrot.slane %v5706_v34, %v1928_v28  ;;  %v5735_v6 = vmov 0 }
  0xf2   :  { %vm3452_vm5 = vcmp.eq.s32.totalorder %v5728_v2, 1  ;;  %v5737_v41 = vrot.slane %v5706_v34, %v1930_v29  ;;  %v5738_v16 = vmov 0  ;;  %vm5743_vm12 = vnez %v5561_v51 }
  0xf3   :  { %v5730_v47 = vsel %vm3452_vm5, 4294967295, %v5729_v47  ;;  %vm3459_vm14 = vcmp.eq.s32.totalorder %v5731_v56, 1  ;;  %vm3466_vm15 = vcmp.eq.s32.totalorder %v5734_v45, 1  ;;  %vm5740_vm5 = vnez %v5552_v59 }
  0xf4   :  { %v5733_v61 = vsel %vm3459_vm14, 4294967295, %v5732_v61  ;;  %v5736_v6 = vsel %vm3466_vm15, 4294967295, %v5735_v6  ;;  %vm3473_vm13 = vcmp.eq.s32.totalorder %v5737_v41, 1  ;;  %v3480_v2 = vsel %vm5740_vm5, %v3109_v36, %v348_v8  ;;  %v5744_v41 = vld [vmem:[#allocation13_spill] sm:$0xff] }
  0xf5   :  { %v5739_v16 = vsel %vm3473_vm13, 4294967295, %v5738_v16  ;;  %vm5741_vm14 = vnez %v5555_v30  ;;  %vm5742_vm15 = vnez %v5558_v18  ;;  %v3495_v34 = vsel %vm5743_vm12, %v3109_v36, %v351_v14 }
  0xf6   :  { %v3485_v56 = vsel %vm5741_vm14, %v3109_v36, %v349_v0  ;;  %v3490_v45 = vsel %vm5742_vm15, %v3109_v36, %v350_v7  ;;  %v5745_v59 = vrot.slane %v5744_v41, %v1910_v21  ;;  %v5746_v8 = vmov 0 }
  0xf7   :  { %v5748_v30 = vrot.slane %v5744_v41, %v1912_v22  ;;  %v5749_v0 = vmov 0  ;;  %v5751_v18 = vrot.slane %v5744_v41, %v1914_v23  ;;  %v5752_v51 = vmov 0 }
  0xf8   :  { %vm3500_vm5 = vcmp.eq.s32.totalorder %v5745_v59, 1  ;;  %v5754_v36 = vrot.slane %v5744_v41, %v1919_v24  ;;  %v5755_v7 = vmov 0  ;;  %vm5760_vm13 = vnez %v5577_v53 }
  0xf9   :  { %v5747_v8 = vsel %vm3500_vm5, 4294967295, %v5746_v8  ;;  %vm3507_vm14 = vcmp.eq.s32.totalorder %v5748_v30, 1  ;;  %vm3514_vm15 = vcmp.eq.s32.totalorder %v5751_v18, 1  ;;  %vm5757_vm5 = vnez %v5568_v48 }
  0xfa   :  { %v5750_v0 = vsel %vm3507_vm14, 4294967295, %v5749_v0  ;;  %v5753_v51 = vsel %vm3514_vm15, 4294967295, %v5752_v51  ;;  %vm3521_vm12 = vcmp.eq.s32.totalorder %v5754_v36, 1  ;;  %v544_v14 = vsel %vm5757_vm5, %v3379_v3, %v3334_v49 }
  0xfb   :  { %v5756_v7 = vsel %vm3521_vm12, 4294967295, %v5755_v7  ;;  %vm5758_vm14 = vnez %v5571_v46  ;;  %vm5759_vm15 = vnez %v5574_v60  ;;  %v547_v18 = vsel %vm5760_vm13, %v3379_v3, %v3349_v19 }
  0xfc   :  { %v545_v59 = vsel %vm5758_vm14, %v3379_v3, %v3339_v33  ;;  %v546_v30 = vsel %vm5759_vm15, %v3379_v3, %v3344_v17  ;;  %v5761_v36 = vrot.slane %v5744_v41, %v1921_v25  ;;  %v5762_v48 = vmov 0 }
  0xfd   :  { %v5764_v46 = vrot.slane %v5744_v41, %v1923_v26  ;;  %v5765_v49 = vmov 0  ;;  %v5767_v60 = vrot.slane %v5744_v41, %v1928_v28  ;;  %v5768_v53 = vmov 0 }
  0xfe   :  { %vm3544_vm12 = vcmp.eq.s32.totalorder %v5761_v36, 1  ;;  %v5770_v19 = vrot.slane %v5744_v41, %v1930_v29  ;;  %v5771_v17 = vmov 0  ;;  %vm5773_vm15 = vnez %v5584_v38 }
  0xff   :  { %v5763_v48 = vsel %vm3544_vm12, 4294967295, %v5762_v48  ;;  %vm3551_vm5 = vcmp.eq.s32.totalorder %v5764_v46, 1  ;;  %vm3558_vm14 = vcmp.eq.s32.totalorder %v5767_v60, 1  ;;  %v548_v33 = vsel %vm5773_vm15, %v3379_v3, %v3384_v40  ;;  %v646_v60 = vpop.permute.xlu0 %645 }
 0x100   :  { %v5766_v49 = vsel %vm3551_vm5, 4294967295, %v5765_v49  ;;  %v5769_v53 = vsel %vm3558_vm14, 4294967295, %v5768_v53  ;;  %vm3565_vm13 = vcmp.eq.s32.totalorder %v5770_v19, 1  ;;  %vm5774_vm5 = vnez %v5587_v31  ;;  %v5777_v19 = vld [vmem:[#allocation14_spill] sm:$0xff] }
 0x101   :  { %v5772_v17 = vsel %vm3565_vm13, 4294967295, %v5771_v17  ;;  %v549_v36 = vsel %vm5774_vm5, %v3379_v3, %v3389_v15  ;;  %vm5775_vm14 = vnez %v5590_v43  ;;  %vm5776_vm12 = vnez %v5593_v37 }
 0x102   :  { %v550_v46 = vsel %vm5775_vm14, %v3379_v3, %v3394_v50  ;;  %v551_v41 = vsel %vm5776_vm12, %v3379_v3, %v3399_v13  ;;  %v5778_v38 = vrot.slane %v5777_v19, %v1910_v21  ;;  %v5779_v40 = vmov 0 }
 0x103   :  { %v5781_v31 = vrot.slane %v5777_v19, %v1912_v22  ;;  %v5782_v15 = vmov 0  ;;  %v5784_v43 = vrot.slane %v5777_v19, %v1914_v23  ;;  %v5785_v37 = vmov 0 }
 0x104   :  { %vm3588_vm15 = vcmp.eq.s32.totalorder %v5778_v38, 1  ;;  %v5787_v13 = vrot.slane %v5777_v19, %v1919_v24  ;;  %v5788_v50 = vmov 0  ;;  %vm5794_vm13 = vnez %v5609_v39 }
 0x105   :  { %v5780_v40 = vsel %vm3588_vm15, 4294967295, %v5779_v40  ;;  %vm3595_vm5 = vcmp.eq.s32.totalorder %v5781_v31, 1  ;;  %vm3602_vm14 = vcmp.eq.s32.totalorder %v5784_v43, 1  ;;  %vm5791_vm15 = vnez %v5600_v54 }
 0x106   :  { %v5783_v15 = vsel %vm3595_vm5, 4294967295, %v5782_v15  ;;  %v5786_v37 = vsel %vm3602_vm14, 4294967295, %v5785_v37  ;;  %vm3609_vm12 = vcmp.eq.s32.totalorder %v5787_v13, 1  ;;  %v552_v38 = vsel %vm5791_vm15, %v3379_v3, %v3432_v62 }
 0x107   :  { %v5789_v50 = vsel %vm3609_vm12, 4294967295, %v5788_v50  ;;  %vm5792_vm5 = vnez %v5603_v52  ;;  %vm5793_vm14 = vnez %v5606_v63  ;;  %v555_v13 = vsel %vm5794_vm13, %v3379_v3, %v3447_v35 }
 0x108   :  { %5790 = vst [vmem:[#allocation40_spill] sm:$0xff] %v5789_v50  ;;  %v553_v31 = vsel %vm5792_vm5, %v3379_v3, %v3437_v12  ;;  %v554_v43 = vsel %vm5793_vm14, %v3379_v3, %v3442_v20  ;;  %v5795_v50 = vrot.slane %v5777_v19, %v1921_v25  ;;  %v5796_v54 = vmov 0 }
 0x109   :  { %v5798_v52 = vrot.slane %v5777_v19, %v1923_v26  ;;  %v5799_v12 = vmov 0  ;;  %v5801_v63 = vrot.slane %v5777_v19, %v1928_v28  ;;  %v5802_v39 = vmov 0 }
 0x10a   :  { %vm3632_vm12 = vcmp.eq.s32.totalorder %v5795_v50, 1  ;;  %v5804_v35 = vrot.slane %v5777_v19, %v1930_v29  ;;  %vm5807_vm14 = vnez %v5616_v10 }
 0x10b   :  { %v5797_v54 = vsel %vm3632_vm12, 4294967295, %v5796_v54  ;;  %vm3639_vm15 = vcmp.eq.s32.totalorder %v5798_v52, 1  ;;  %vm3646_vm5 = vcmp.eq.s32.totalorder %v5801_v63, 1  ;;  %v556_v62 = vsel %vm5807_vm14, %v3379_v3, %v3480_v2  ;;  %v3673_v63 = vpop.permute.xlu1 %749 }
 0x10c   :  { %v5800_v12 = vsel %vm3639_vm15, 4294967295, %v5799_v12  ;;  %v5803_v39 = vsel %vm3646_vm5, 4294967295, %v5802_v39  ;;  %vm3653_vm13 = vcmp.eq.s32.totalorder %v5804_v35, 1  ;;  %vm5808_vm15 = vnez %v5619_v42  ;;  %v5811_v35 = vld [vmem:[#allocation15_spill] sm:$0xff] }
 0x10d   :  { %v557_v50 = vsel %vm5808_vm15, %v3379_v3, %v3485_v56  ;;  %vm5809_vm5 = vnez %v5622_v4  ;;  %vm5810_vm12 = vnez %v5625_v44  ;;  %v5812_v10 = vrot.slane %v5811_v35, %v1910_v21 }
 0x10e   :  { %v558_v52 = vsel %vm5809_vm5, %v3379_v3, %v3490_v45  ;;  %v559_v19 = vsel %vm5810_vm12, %v3379_v3, %v3495_v34  ;;  %v5815_v42 = vrot.slane %v5811_v35, %v1912_v22  ;;  %v5818_v44 = vrot.slane %v5811_v35, %v1914_v23 }
 0x10f   :  { %vm3678_vm14 = vcmp.eq.s32.totalorder %v5812_v10, 1  ;;  %v5819_v3 = vmov 0  ;;  %v5821_v56 = vrot.slane %v5811_v35, %v1919_v24  ;;  %v5822_v45 = vmov 0 }
 0x110   :  { %vm3685_vm15 = vcmp.eq.s32.totalorder %v5815_v42, 1  ;;  %vm3692_vm12 = vcmp.eq.s32.totalorder %v5818_v44, 1  ;;  %v3705_v34 = vsel %vm3218_vm3, %v646_v60, %v544_v14  ;;  %v3709_v10 = vsel %vm3225_vm9, %v646_v60, %v545_v59 }
 0x111   :  { %v5820_v3 = vsel %vm3692_vm12, 4294967295, %v5819_v3  ;;  %vm3699_vm5 = vcmp.eq.s32.totalorder %v5821_v56, 1  ;;  %v3713_v42 = vsel %vm3232_vm1, %v646_v60, %v546_v30  ;;  %vm5825_vm12 = vnez %v5641_v5 }
 0x112   :  { %v5823_v45 = vsel %vm3699_vm5, 4294967295, %v5822_v45  ;;  %v3717_v44 = vsel %vm5825_vm12, %v646_v60, %v547_v18  ;;  %v5826_v56 = vrot.slane %v5811_v35, %v1921_v25  ;;  %v5829_v32 = vrot.slane %v5811_v35, %v1923_v26 }
 0x113   :  { %5824 = vst [vmem:[#allocation41_spill] sm:$0xff] %v5823_v45  ;;  %v5833_v1 = vrot.slane %v5811_v35, %v1928_v28  ;;  %v5834_v5 = vmov 0  ;;  %v5837_v14 = vrot.slane %v5811_v35, %v1930_v29  ;;  %v5838_v59 = vmov 0  ;;  %v5844_v35 = vld [vmem:[#allocation16_spill] sm:$0xff] }
 0x114   :  { %vm3722_vm5 = vcmp.eq.s32.totalorder %v5826_v56, 1  ;;  %vm3729_vm3 = vcmp.eq.s32.totalorder %v5829_v32, 1  ;;  %v3749_v30 = vsel %vm3262_vm0, %v646_v60, %v548_v33  ;;  %v3753_v56 = vsel %vm3269_vm2, %v646_v60, %v549_v36 }
 0x115   :  { %v5831_v9 = vsel %vm3729_vm3, 4294967295, %v5830_v9  ;;  %vm3736_vm9 = vcmp.eq.s32.totalorder %v5833_v1, 1  ;;  %vm3743_vm1 = vcmp.eq.s32.totalorder %v5837_v14, 1  ;;  %v3757_v1 = vsel %vm3276_vm8, %v646_v60, %v550_v46 }
 0x116   :  { %5832 = vst [vmem:[#allocation42_spill] sm:$0xff] %v5831_v9  ;;  %v5835_v5 = vsel %vm3736_vm9, 4294967295, %v5834_v5  ;;  %v5839_v59 = vsel %vm3743_vm1, 4294967295, %v5838_v59  ;;  %v3761_v9 = vsel %vm3283_vm6, %v646_v60, %v551_v41  ;;  %v5845_v14 = vrot.slane %v5844_v35, %v1910_v21 }
 0x117   :  { %5836 = vst [vmem:[#allocation12_spill] sm:$0xff] %v5835_v5  ;;  %5840 = vst [vmem:[#allocation43_spill] sm:$0xff] %v5839_v59  ;;  %v5848_v58 = vrot.slane %v5844_v35, %v1912_v22  ;;  %v5851_v36 = vrot.slane %v5844_v35, %v1914_v23  ;;  %v5852_v46 = vmov 0  ;;  %v5855_v41 = vrot.slane %v5844_v35, %v1919_v24 }
 0x118   :  { %vm3766_vm12 = vcmp.eq.s32.totalorder %v5845_v14, 1  ;;  %v5856_v5 = vmov 0  ;;  %v3793_v18 = vsel %vm3306_vm4, %v646_v60, %v552_v38  ;;  %v3797_v14 = vsel %vm3313_vm7, %v646_v60, %v553_v31 }
 0x119   :  { %vm3773_vm0 = vcmp.eq.s32.totalorder %v5848_v58, 1  ;;  %vm3780_vm2 = vcmp.eq.s32.totalorder %v5851_v36, 1  ;;  %vm3787_vm8 = vcmp.eq.s32.totalorder %v5855_v41, 1  ;;  %v3801_v36 = vsel %vm3320_vm10, %v646_v60, %v554_v43  ;;  %v5877_v58 = vld [vmem:[#allocation35_spill] sm:$0xff] }
 0x11a   :  { %v5853_v46 = vsel %vm3780_vm2, 4294967295, %v5852_v46  ;;  %v5857_v5 = vsel %vm3787_vm8, 4294967295, %v5856_v5  ;;  %v5861_v41 = vrot.slane %v5844_v35, %v1921_v25  ;;  %v5864_v57 = vrot.slane %v5844_v35, %v1923_v26 }
 0x11b   :  { %5854 = vst [vmem:[#allocation44_spill] sm:$0xff] %v5853_v46  ;;  %5858 = vst [vmem:[#allocation45_spill] sm:$0xff] %v5857_v5  ;;  %v3805_v46 = vsel %vm3327_vm11, %v646_v60, %v555_v13  ;;  %v5862_v5 = vmov 0  ;;  %v5865_v38 = vmov 0  ;;  %v5868_v31 = vrot.slane %v5844_v35, %v1928_v28 }
 0x11c   :  { %vm3810_vm6 = vcmp.eq.s32.totalorder %v5861_v41, 1  ;;  %vm3817_vm4 = vcmp.eq.s32.totalorder %v5864_v57, 1  ;;  %v5872_v43 = vrot.slane %v5844_v35, %v1930_v29  ;;  %v5873_v13 = vmov 0  ;;  %v5879_v57 = vld [vmem:[#allocation36_spill] sm:$0xff]  ;;  %v5883_v35 = vld [vmem:[#allocation17_spill] sm:$0xff] }
 0x11d   :  { %v5863_v5 = vsel %vm3810_vm6, 4294967295, %v5862_v5  ;;  %v5866_v38 = vsel %vm3817_vm4, 4294967295, %v5865_v38  ;;  %vm3824_vm7 = vcmp.eq.s32.totalorder %v5868_v31, 1  ;;  %vm5876_vm11 = vnez %v5687_v27 }
 0x11e   :  { %5867 = vst [vmem:[#allocation13_spill] sm:$0xff] %v5866_v38  ;;  %v5870_v11 = vsel %vm3824_vm7, 4294967295, %v5869_v11  ;;  %vm3831_vm10 = vcmp.eq.s32.totalorder %v5872_v43, 1  ;;  %v3837_v32 = vsel %vm5876_vm11, %v646_v60, %v556_v62  ;;  %vm5878_vm4 = vnez %v5877_v58 }
 0x11f   :  { %5871 = vst [vmem:[#allocation14_spill] sm:$0xff] %v5870_v11  ;;  %v5874_v13 = vsel %vm3831_vm10, 4294967295, %v5873_v13  ;;  %v3841_v41 = vsel %vm5878_vm4, %v646_v60, %v557_v50  ;;  %vm5880_vm6 = vnez %v5879_v57  ;;  %v5881_v11 = vld [vmem:[#allocation11_spill] sm:$0xff]  ;;  %v5884_v43 = vrot.slane %v5883_v35, %v1910_v21  ;;  %v5899_v57 = vld [vmem:[#allocation38_spill] sm:$0xff] }
 0x120   :  { %5875 = vst [vmem:[#allocation15_spill] sm:$0xff] %v5874_v13  ;;  %v3845_v31 = vsel %vm5880_vm6, %v646_v60, %v558_v52  ;;  %vm5882_vm7 = vnez %v5881_v11  ;;  %v5885_v13 = vmov 0  ;;  %v5887_v27 = vrot.slane %v5883_v35, %v1912_v22  ;;  %v5897_v11 = vld [vmem:[#allocation37_spill] sm:$0xff] }
 0x121   :  { %v3849_v38 = vsel %vm5882_vm7, %v646_v60, %v559_v19  ;;  %vm3854_vm10 = vcmp.eq.s32.totalorder %v5884_v43, 1  ;;  %v5888_v62 = vmov 0  ;;  %v5890_v50 = vrot.slane %v5883_v35, %v1914_v23 }
 0x122   :  { %v5886_v13 = vsel %vm3854_vm10, 4294967295, %v5885_v13  ;;  %vm3861_vm4 = vcmp.eq.s32.totalorder %v5887_v27, 1  ;;  %v5891_v60 = vmov 0  ;;  %v5893_v52 = vrot.slane %v5883_v35, %v1919_v24  ;;  %v5901_v27 = vld [vmem:[#allocation39_spill] sm:$0xff] }
 0x123   :  { %v5889_v62 = vsel %vm3861_vm4, 4294967295, %v5888_v62  ;;  %vm3868_vm6 = vcmp.eq.s32.totalorder %v5890_v50, 1  ;;  %v5894_v19 = vmov 0  ;;  %vm5898_vm11 = vnez %v5897_v11 }
 0x124   :  { %v5892_v60 = vsel %vm3868_vm6, 4294967295, %v5891_v60  ;;  %vm3875_vm7 = vcmp.eq.s32.totalorder %v5893_v52, 1  ;;  %v752_v58 = vsel %vm5898_vm11, %v3673_v63, %v3705_v34  ;;  %vm5900_vm4 = vnez %v5899_v57 }
 0x125   :  { %v5895_v19 = vsel %vm3875_vm7, 4294967295, %v5894_v19  ;;  %v753_v43 = vsel %vm5900_vm4, %v3673_v63, %v3709_v10  ;;  %vm5902_vm6 = vnez %v5901_v27  ;;  %vm5903_vm10 = vnez %v5721_v55 }
 0x126   :  { %5896 = vst [vmem:[#allocation30_spill] sm:$0xff] %v5895_v19  ;;  %v754_v50 = vsel %vm5902_vm6, %v3673_v63, %v3713_v42  ;;  %v755_v52 = vsel %vm5903_vm10, %v3673_v63, %v3717_v44  ;;  %v5904_v19 = vrot.slane %v5883_v35, %v1921_v25  ;;  %v5905_v34 = vmov 0 }
 0x127   :  { %v5907_v10 = vrot.slane %v5883_v35, %v1923_v26  ;;  %v5908_v11 = vmov 0  ;;  %v5910_v42 = vrot.slane %v5883_v35, %v1928_v28  ;;  %v5911_v55 = vmov 0 }
 0x128   :  { %vm3898_vm7 = vcmp.eq.s32.totalorder %v5904_v19, 1  ;;  %v5913_v44 = vrot.slane %v5883_v35, %v1930_v29  ;;  %v5914_v19 = vmov 0  ;;  %vm5916_vm11 = vnez %v5730_v47 }
 0x129   :  { %v5906_v34 = vsel %vm3898_vm7, 4294967295, %v5905_v34  ;;  %vm3905_vm4 = vcmp.eq.s32.totalorder %v5907_v10, 1  ;;  %vm3912_vm6 = vcmp.eq.s32.totalorder %v5910_v42, 1  ;;  %v756_v57 = vsel %vm5916_vm11, %v3673_v63, %v3749_v30  ;;  %v854_v42 = vpop.permute.xlu1 %853 }
 0x12a   :  { %v5909_v11 = vsel %vm3905_vm4, 4294967295, %v5908_v11  ;;  %v5912_v55 = vsel %vm3912_vm6, 4294967295, %v5911_v55  ;;  %vm3919_vm10 = vcmp.eq.s32.totalorder %v5913_v44, 1  ;;  %vm5917_vm4 = vnez %v5733_v61  ;;  %v5920_v44 = vld [vmem:[#allocation18_spill] sm:$0xff] }
 0x12b   :  { %v5915_v19 = vsel %vm3919_vm10, 4294967295, %v5914_v19  ;;  %v757_v27 = vsel %vm5917_vm4, %v3673_v63, %v3753_v56  ;;  %vm5918_vm6 = vnez %v5736_v6  ;;  %vm5919_vm7 = vnez %v5739_v16 }
 0x12c   :  { %v758_v10 = vsel %vm5918_vm6, %v3673_v63, %v3757_v1  ;;  %v759_v35 = vsel %vm5919_vm7, %v3673_v63, %v3761_v9  ;;  %v5921_v47 = vrot.slane %v5920_v44, %v1910_v21  ;;  %v5922_v30 = vmov 0 }
 0x12d   :  { %v5924_v61 = vrot.slane %v5920_v44, %v1912_v22  ;;  %v5925_v56 = vmov 0  ;;  %v5927_v6 = vrot.slane %v5920_v44, %v1914_v23  ;;  %v5928_v16 = vmov 0 }
 0x12e   :  { %vm3942_vm11 = vcmp.eq.s32.totalorder %v5921_v47, 1  ;;  %v5930_v9 = vrot.slane %v5920_v44, %v1919_v24  ;;  %v5931_v1 = vmov 0  ;;  %vm5937_vm10 = vnez %v5756_v7 }
 0x12f   :  { %v5923_v30 = vsel %vm3942_vm11, 4294967295, %v5922_v30  ;;  %vm3949_vm4 = vcmp.eq.s32.totalorder %v5924_v61, 1  ;;  %vm3956_vm6 = vcmp.eq.s32.totalorder %v5927_v6, 1  ;;  %vm5934_vm11 = vnez %v5747_v8 }
 0x130   :  { %v5926_v56 = vsel %vm3949_vm4, 4294967295, %v5925_v56  ;;  %v5929_v16 = vsel %vm3956_vm6, 4294967295, %v5928_v16  ;;  %vm3963_vm7 = vcmp.eq.s32.totalorder %v5930_v9, 1  ;;  %v760_v47 = vsel %vm5934_vm11, %v3673_v63, %v3793_v18 }
 0x131   :  { %v5932_v1 = vsel %vm3963_vm7, 4294967295, %v5931_v1  ;;  %vm5935_vm4 = vnez %v5750_v0  ;;  %vm5936_vm6 = vnez %v5753_v51  ;;  %v763_v9 = vsel %vm5937_vm10, %v3673_v63, %v3805_v46 }
 0x132   :  { %5933 = vst [vmem:[#allocation31_spill] sm:$0xff] %v5932_v1  ;;  %v761_v61 = vsel %vm5935_vm4, %v3673_v63, %v3797_v14  ;;  %v762_v6 = vsel %vm5936_vm6, %v3673_v63, %v3801_v36  ;;  %v5938_v1 = vrot.slane %v5920_v44, %v1921_v25  ;;  %v5939_v8 = vmov 0 }
 0x133   :  { %v5941_v0 = vrot.slane %v5920_v44, %v1923_v26  ;;  %v5942_v18 = vmov 0  ;;  %v5944_v51 = vrot.slane %v5920_v44, %v1928_v28  ;;  %v5945_v7 = vmov 0 }
 0x134   :  { %vm3986_vm7 = vcmp.eq.s32.totalorder %v5938_v1, 1  ;;  %v5947_v46 = vrot.slane %v5920_v44, %v1930_v29  ;;  %v5948_v14 = vmov 0  ;;  %vm5950_vm6 = vnez %v5763_v48 }
 0x135   :  { %v5940_v8 = vsel %vm3986_vm7, 4294967295, %v5939_v8  ;;  %vm3993_vm11 = vcmp.eq.s32.totalorder %v5941_v0, 1  ;;  %vm4000_vm4 = vcmp.eq.s32.totalorder %v5944_v51, 1  ;;  %v764_v36 = vsel %vm5950_vm6, %v3673_v63, %v3837_v32  ;;  %v5954_v51 = vld [vmem:[#allocation19_spill] sm:$0xff] }
 0x136   :  { %v5943_v18 = vsel %vm3993_vm11, 4294967295, %v5942_v18  ;;  %v5946_v7 = vsel %vm4000_vm4, 4294967295, %v5945_v7  ;;  %vm4007_vm10 = vcmp.eq.s32.totalorder %v5947_v46, 1  ;;  %vm5951_vm11 = vnez %v5766_v49 }
 0x137   :  { %v5949_v14 = vsel %vm4007_vm10, 4294967295, %v5948_v14  ;;  %v765_v1 = vsel %vm5951_vm11, %v3673_v63, %v3841_v41  ;;  %vm5952_vm4 = vnez %v5769_v53  ;;  %vm5953_vm7 = vnez %v5772_v17 }
 0x138   :  { %v766_v0 = vsel %vm5952_vm4, %v3673_v63, %v3845_v31  ;;  %v767_v44 = vsel %vm5953_vm7, %v3673_v63, %v3849_v38  ;;  %v5955_v46 = vrot.slane %v5954_v51, %v1910_v21  ;;  %v5956_v48 = vmov 0 }
 0x139   :  { %v5958_v49 = vrot.slane %v5954_v51, %v1912_v22  ;;  %v5959_v32 = vmov 0  ;;  %v5961_v53 = vrot.slane %v5954_v51, %v1914_v23  ;;  %v5962_v17 = vmov 0 }
 0x13a   :  { %vm4030_vm10 = vcmp.eq.s32.totalorder %v5955_v46, 1  ;;  %v5964_v63 = vrot.slane %v5954_v51, %v1919_v24  ;;  %v5965_v38 = vmov 0  ;;  %vm5968_vm6 = vnez %v5780_v40 }
 0x13b   :  { %v5957_v48 = vsel %vm4030_vm10, 4294967295, %v5956_v48  ;;  %vm4037_vm11 = vcmp.eq.s32.totalorder %v5958_v49, 1  ;;  %vm4044_vm4 = vcmp.eq.s32.totalorder %v5961_v53, 1  ;;  %v4057_v41 = vsel %vm5968_vm6, %v854_v42, %v752_v58  ;;  %v5971_v49 = vld [vmem:[#allocation40_spill] sm:$0xff] }
 0x13c   :  { %v5960_v32 = vsel %vm4037_vm11, 4294967295, %v5959_v32  ;;  %v5963_v17 = vsel %vm4044_vm4, 4294967295, %v5962_v17  ;;  %vm4051_vm7 = vcmp.eq.s32.totalorder %v5964_v63, 1  ;;  %vm5969_vm11 = vnez %v5783_v15 }
 0x13d   :  { %v5966_v38 = vsel %vm4051_vm7, 4294967295, %v5965_v38  ;;  %v4061_v31 = vsel %vm5969_vm11, %v854_v42, %v753_v43  ;;  %vm5970_vm10 = vnez %v5786_v37  ;;  %vm5972_vm4 = vnez %v5971_v49 }
 0x13e   :  { %5967 = vst [vmem:[#allocation32_spill] sm:$0xff] %v5966_v38  ;;  %v4065_v46 = vsel %vm5970_vm10, %v854_v42, %v754_v50  ;;  %v4069_v53 = vsel %vm5972_vm4, %v854_v42, %v755_v52  ;;  %v5973_v63 = vrot.slane %v5954_v51, %v1921_v25  ;;  %v5974_v38 = vmov 0 }
 0x13f   :  { %v5976_v40 = vrot.slane %v5954_v51, %v1923_v26  ;;  %v5977_v15 = vmov 0  ;;  %v5979_v37 = vrot.slane %v5954_v51, %v1928_v28  ;;  %v5982_v43 = vrot.slane %v5954_v51, %v1930_v29  ;;  %v4115_v51 = vpop.permute.xlu0 %957 }
 0x140   :  { %vm4074_vm7 = vcmp.eq.s32.totalorder %v5973_v63, 1  ;;  %v5983_v50 = vmov 0  ;;  %vm5985_vm6 = vnez %v5797_v54  ;;  %v6010_v4 = vmov 0 }
 0x141   :  { %v5975_v38 = vsel %vm4074_vm7, 4294967295, %v5974_v38  ;;  %vm4081_vm11 = vcmp.eq.s32.totalorder %v5976_v40, 1  ;;  %vm4088_vm10 = vcmp.eq.s32.totalorder %v5979_v37, 1  ;;  %vm4095_vm4 = vcmp.eq.s32.totalorder %v5982_v43, 1  ;;  %v5988_v37 = vld [vmem:[#allocation20_spill] sm:$0xff] }
 0x142   :  { %v5978_v15 = vsel %vm4081_vm11, 4294967295, %v5977_v15  ;;  %v5984_v50 = vsel %vm4095_vm4, 4294967295, %v5983_v50  ;;  %v4101_v52 = vsel %vm5985_vm6, %v854_v42, %v756_v57  ;;  %vm5986_vm11 = vnez %v5800_v12 }
 0x143   :  { %v4105_v49 = vsel %vm5986_vm11, %v854_v42, %v757_v27  ;;  %vm5987_vm7 = vnez %v5803_v39  ;;  %v4113_v40 = vsel %vm3653_vm13, %v854_v42, %v759_v35  ;;  %v5989_v43 = vrot.slane %v5988_v37, %v1910_v21 }
 0x144   :  { %v4109_v63 = vsel %vm5987_vm7, %v854_v42, %v758_v10  ;;  %v5992_v12 = vrot.slane %v5988_v37, %v1912_v22  ;;  %v5995_v20 = vrot.slane %v5988_v37, %v1914_v23  ;;  %v5996_v57 = vmov 0 }
 0x145   :  { %vm4120_vm4 = vcmp.eq.s32.totalorder %v5989_v43, 1  ;;  %v5999_v27 = vrot.slane %v5988_v37, %v1919_v24  ;;  %v6000_v10 = vmov 0  ;;  %v4147_v35 = vsel %vm3678_vm14, %v854_v42, %v760_v47 }
 0x146   :  { %vm4127_vm11 = vcmp.eq.s32.totalorder %v5992_v12, 1  ;;  %vm4134_vm13 = vcmp.eq.s32.totalorder %v5995_v20, 1  ;;  %v4151_v43 = vsel %vm3685_vm15, %v854_v42, %v761_v61  ;;  %vm6003_vm6 = vnez %v5820_v3  ;;  %v6004_v20 = vld [vmem:[#allocation41_spill] sm:$0xff] }
 0x147   :  { %v5997_v57 = vsel %vm4134_vm13, 4294967295, %v5996_v57  ;;  %vm4141_vm7 = vcmp.eq.s32.totalorder %v5999_v27, 1  ;;  %v4155_v12 = vsel %vm6003_vm6, %v854_v42, %v762_v6  ;;  %vm6005_vm13 = vnez %v6004_v20 }
 0x148   :  { %5998 = vst [vmem:[#allocation16_spill] sm:$0xff] %v5997_v57  ;;  %v6001_v10 = vsel %vm4141_vm7, 4294967295, %v6000_v10  ;;  %v4159_v57 = vsel %vm6005_vm13, %v854_v42, %v763_v9  ;;  %v6006_v27 = vrot.slane %v5988_v37, %v1921_v25  ;;  %v6009_v2 = vrot.slane %v5988_v37, %v1923_v26 }
 0x149   :  { %6002 = vst [vmem:[#allocation33_spill] sm:$0xff] %v6001_v10  ;;  %v6013_v3 = vrot.slane %v5988_v37, %v1928_v28  ;;  %v6014_v47 = vmov 0  ;;  %v6017_v61 = vrot.slane %v5988_v37, %v1930_v29  ;;  %v6018_v6 = vmov 0  ;;  %v4205_v37 = vpop.permute.xlu1 %1061 }
 0x14a   :  { %vm4164_vm7 = vcmp.eq.s32.totalorder %v6006_v27, 1  ;;  %vm4171_vm14 = vcmp.eq.s32.totalorder %v6009_v2, 1  ;;  %v4191_v9 = vsel %vm3722_vm5, %v854_v42, %v764_v36  ;;  %v4195_v27 = vsel %vm3729_vm3, %v854_v42, %v765_v1 }
 0x14b   :  { %v6011_v4 = vsel %vm4171_vm14, 4294967295, %v6010_v4  ;;  %vm4178_vm15 = vcmp.eq.s32.totalorder %v6013_v3, 1  ;;  %vm4185_vm13 = vcmp.eq.s32.totalorder %v6017_v61, 1  ;;  %v4199_v3 = vsel %vm3736_vm9, %v854_v42, %v766_v0  ;;  %v6024_v61 = vld [vmem:[#allocation21_spill] sm:$0xff] }
 0x14c   :  { %6012 = vst [vmem:[#allocation34_spill] sm:$0xff] %v6011_v4  ;;  %v6015_v47 = vsel %vm4178_vm15, 4294967295, %v6014_v47  ;;  %v6019_v6 = vsel %vm4185_vm13, 4294967295, %v6018_v6  ;;  %v4203_v4 = vsel %vm3743_vm1, %v854_v42, %v767_v44  ;;  %v6028_v36 = vrot.slane %v6024_v61, %v1912_v22 }
 0x14d   :  { %6016 = vst [vmem:[#allocation35_spill] sm:$0xff] %v6015_v47  ;;  %6020 = vst [vmem:[#allocation36_spill] sm:$0xff] %v6019_v6  ;;  %v6025_v6 = vrot.slane %v6024_v61, %v1910_v21  ;;  %v6031_v42 = vrot.slane %v6024_v61, %v1914_v23  ;;  %v6034_v44 = vrot.slane %v6024_v61, %v1919_v24  ;;  %v6035_v47 = vmov 0 }
 0x14e   :  { %vm4217_vm5 = vcmp.eq.s32.totalorder %v6028_v36, 1  ;;  %v961_v20 = vsel %vm3773_vm0, %v4115_v51, %v4061_v31  ;;  %v962_v36 = vsel %vm3780_vm2, %v4115_v51, %v4065_v46  ;;  %v6041_v59 = vmov 0 }
 0x14f   :  { %vm4210_vm6 = vcmp.eq.s32.totalorder %v6025_v6, 1  ;;  %vm4224_vm3 = vcmp.eq.s32.totalorder %v6031_v42, 1  ;;  %vm4231_vm9 = vcmp.eq.s32.totalorder %v6034_v44, 1  ;;  %v960_v6 = vsel %vm3766_vm12, %v4115_v51, %v4057_v41  ;;  %v6056_v42 = vld [vmem:[#allocation13_spill] sm:$0xff] }
 0x150   :  { %v6036_v47 = vsel %vm4231_vm9, 4294967295, %v6035_v47  ;;  %v963_v44 = vsel %vm3787_vm8, %v4115_v51, %v4069_v53  ;;  %v6043_v33 = vrot.slane %v6024_v61, %v1923_v26  ;;  %v6044_v41 = vmov 0 }
 0x151   :  { %6037 = vst [vmem:[#allocation11_spill] sm:$0xff] %v6036_v47  ;;  %v6040_v47 = vrot.slane %v6024_v61, %v1921_v25  ;;  %v6047_v31 = vrot.slane %v6024_v61, %v1928_v28  ;;  %v6048_v46 = vmov 0  ;;  %v6051_v53 = vrot.slane %v6024_v61, %v1930_v29  ;;  %v6060_v61 = vld [vmem:[#allocation15_spill] sm:$0xff] }
 0x152   :  { %vm4261_vm12 = vcmp.eq.s32.totalorder %v6043_v33, 1  ;;  %vm6055_vm8 = vnez %v5863_v5  ;;  %v6064_v5 = vmov 0  ;;  %v6220_v45 = vmov 0 }
 0x153   :  { %vm4254_vm1 = vcmp.eq.s32.totalorder %v6040_v47, 1  ;;  %v6045_v41 = vsel %vm4261_vm12, 4294967295, %v6044_v41  ;;  %vm4268_vm0 = vcmp.eq.s32.totalorder %v6047_v31, 1  ;;  %vm4275_vm2 = vcmp.eq.s32.totalorder %v6051_v53, 1  ;;  %v6058_v31 = vld [vmem:[#allocation14_spill] sm:$0xff] }
 0x154   :  { %v6042_v59 = vsel %vm4254_vm1, 4294967295, %v6041_v59  ;;  %6046 = vst [vmem:[#allocation17_spill] sm:$0xff] %v6045_v41  ;;  %v6049_v46 = vsel %vm4268_vm0, 4294967295, %v6048_v46  ;;  %v6052_v47 = vmov 0  ;;  %v964_v2 = vsel %vm6055_vm8, %v4115_v51, %v4101_v52 }
 0x155   :  { %6050 = vst [vmem:[#allocation37_spill] sm:$0xff] %v6049_v46  ;;  %v6053_v47 = vsel %vm4275_vm2, 4294967295, %v6052_v47  ;;  %vm6057_vm12 = vnez %v6056_v42  ;;  %vm6059_vm0 = vnez %v6058_v31  ;;  %vm6061_vm1 = vnez %v6060_v61 }
 0x156   :  { %6054 = vst [vmem:[#allocation38_spill] sm:$0xff] %v6053_v47  ;;  %v965_v33 = vsel %vm6057_vm12, %v4115_v51, %v4105_v49  ;;  %v966_v46 = vsel %vm6059_vm0, %v4115_v51, %v4109_v63  ;;  %v967_v53 = vsel %vm6061_vm1, %v4115_v51, %v4113_v40  ;;  %v6062_v47 = vld [vmem:[#allocation22_spill] sm:$0xff]  ;;  %v6067_v49 = vmov 0 }
 0x157   :  { %v6063_v41 = vrot.slane %v6062_v47, %v1910_v21  ;;  %v6066_v52 = vrot.slane %v6062_v47, %v1912_v22  ;;  %v6069_v63 = vrot.slane %v6062_v47, %v1914_v23  ;;  %v6070_v42 = vmov 0 }
 0x158   :  { %v6072_v40 = vrot.slane %v6062_v47, %v1919_v24  ;;  %vm6076_vm8 = vnez %v5886_v13  ;;  %v6082_v13 = vmov 0 }
 0x159   :  { %vm4298_vm2 = vcmp.eq.s32.totalorder %v6063_v41, 1  ;;  %vm4305_vm12 = vcmp.eq.s32.totalorder %v6066_v52, 1  ;;  %vm4312_vm0 = vcmp.eq.s32.totalorder %v6069_v63, 1  ;;  %v6073_v41 = vmov 0  ;;  %v6079_v63 = vld [vmem:[#allocation30_spill] sm:$0xff] }
 0x15a   :  { %v6065_v5 = vsel %vm4298_vm2, 4294967295, %v6064_v5  ;;  %v6068_v49 = vsel %vm4305_vm12, 4294967295, %v6067_v49  ;;  %v6071_v42 = vsel %vm4312_vm0, 4294967295, %v6070_v42  ;;  %vm4319_vm1 = vcmp.eq.s32.totalorder %v6072_v40, 1 }
 0x15b   :  { %v6074_v41 = vsel %vm4319_vm1, 4294967295, %v6073_v41  ;;  %v968_v31 = vsel %vm6076_vm8, %v4115_v51, %v4147_v35  ;;  %vm6077_vm12 = vnez %v5889_v62  ;;  %vm6078_vm0 = vnez %v5892_v60 }
 0x15c   :  { %6075 = vst [vmem:[#allocation39_spill] sm:$0xff] %v6074_v41  ;;  %v969_v61 = vsel %vm6077_vm12, %v4115_v51, %v4151_v43  ;;  %v970_v52 = vsel %vm6078_vm0, %v4115_v51, %v4155_v12  ;;  %vm6080_vm2 = vnez %v6079_v63  ;;  %v6081_v41 = vrot.slane %v6062_v47, %v1921_v25 }
 0x15d   :  { %v971_v40 = vsel %vm6080_vm2, %v4115_v51, %v4159_v57  ;;  %v6084_v62 = vrot.slane %v6062_v47, %v1923_v26  ;;  %v6085_v35 = vmov 0  ;;  %v6087_v60 = vrot.slane %v6062_v47, %v1928_v28 }
 0x15e   :  { %vm4342_vm1 = vcmp.eq.s32.totalorder %v6081_v41, 1  ;;  %v6088_v43 = vmov 0  ;;  %v6090_v57 = vrot.slane %v6062_v47, %v1930_v29  ;;  %v6091_v12 = vmov 0 }
 0x15f   :  { %v6083_v13 = vsel %vm4342_vm1, 4294967295, %v6082_v13  ;;  %vm4349_vm12 = vcmp.eq.s32.totalorder %v6084_v62, 1  ;;  %vm4356_vm0 = vcmp.eq.s32.totalorder %v6087_v60, 1  ;;  %vm6093_vm8 = vnez %v5906_v34  ;;  %v6097_v60 = vld [vmem:[#allocation23_spill] sm:$0xff] }
 0x160   :  { %v6086_v35 = vsel %vm4349_vm12, 4294967295, %v6085_v35  ;;  %v6089_v43 = vsel %vm4356_vm0, 4294967295, %v6088_v43  ;;  %vm4363_vm2 = vcmp.eq.s32.totalorder %v6090_v57, 1  ;;  %v972_v41 = vsel %vm6093_vm8, %v4115_v51, %v4191_v9 }
 0x161   :  { %v6092_v12 = vsel %vm4363_vm2, 4294967295, %v6091_v12  ;;  %vm6094_vm12 = vnez %v5909_v11  ;;  %vm6095_vm0 = vnez %v5912_v55  ;;  %vm6096_vm1 = vnez %v5915_v19 }
 0x162   :  { %v973_v63 = vsel %vm6094_vm12, %v4115_v51, %v4195_v27  ;;  %v974_v62 = vsel %vm6095_vm0, %v4115_v51, %v4199_v3  ;;  %v975_v47 = vsel %vm6096_vm1, %v4115_v51, %v4203_v4  ;;  %v6098_v57 = vrot.slane %v6097_v60, %v1910_v21 }
 0x163   :  { %v6099_v34 = vmov 0  ;;  %v6101_v11 = vrot.slane %v6097_v60, %v1912_v22  ;;  %v6102_v9 = vmov 0  ;;  %v6104_v55 = vrot.slane %v6097_v60, %v1914_v23 }
 0x164   :  { %vm4386_vm2 = vcmp.eq.s32.totalorder %v6098_v57, 1  ;;  %v6105_v19 = vmov 0  ;;  %v6107_v51 = vrot.slane %v6097_v60, %v1919_v24  ;;  %v6108_v4 = vmov 0 }
 0x165   :  { %v6100_v34 = vsel %vm4386_vm2, 4294967295, %v6099_v34  ;;  %vm4393_vm12 = vcmp.eq.s32.totalorder %v6101_v11, 1  ;;  %vm4400_vm0 = vcmp.eq.s32.totalorder %v6104_v55, 1  ;;  %vm6110_vm8 = vnez %v5923_v30  ;;  %v6113_v11 = vld [vmem:[#allocation31_spill] sm:$0xff] }
 0x166   :  { %v6103_v9 = vsel %vm4393_vm12, 4294967295, %v6102_v9  ;;  %v6106_v19 = vsel %vm4400_vm0, 4294967295, %v6105_v19  ;;  %vm4407_vm1 = vcmp.eq.s32.totalorder %v6107_v51, 1  ;;  %v4414_v27 = vsel %vm6110_vm8, %v4205_v37, %v960_v6 }
 0x167   :  { %v6109_v4 = vsel %vm4407_vm1, 4294967295, %v6108_v4  ;;  %vm6111_vm12 = vnez %v5926_v56  ;;  %vm6112_vm0 = vnez %v5929_v16  ;;  %vm6114_vm2 = vnez %v6113_v11 }
 0x168   :  { %v4419_v3 = vsel %vm6111_vm12, %v4205_v37, %v961_v20  ;;  %v4424_v57 = vsel %vm6112_vm0, %v4205_v37, %v962_v36  ;;  %v4429_v55 = vsel %vm6114_vm2, %v4205_v37, %v963_v44  ;;  %v6115_v30 = vrot.slane %v6097_v60, %v1921_v25 }
 0x169   :  { %v6116_v6 = vmov 0  ;;  %v6118_v56 = vrot.slane %v6097_v60, %v1923_v26  ;;  %v6119_v20 = vmov 0  ;;  %v6121_v16 = vrot.slane %v6097_v60, %v1928_v28 }
 0x16a   :  { %vm4434_vm8 = vcmp.eq.s32.totalorder %v6115_v30, 1  ;;  %v6122_v36 = vmov 0  ;;  %v6124_v44 = vrot.slane %v6097_v60, %v1930_v29  ;;  %v6125_v51 = vmov 0 }
 0x16b   :  { %v6117_v6 = vsel %vm4434_vm8, 4294967295, %v6116_v6  ;;  %vm4441_vm12 = vcmp.eq.s32.totalorder %v6118_v56, 1  ;;  %vm4448_vm0 = vcmp.eq.s32.totalorder %v6121_v16, 1  ;;  %vm6127_vm8 = vnez %v5940_v8  ;;  %v4479_v16 = vpop.permute.xlu1 %1165  ;;  %v6131_v8 = vld [vmem:[#allocation24_spill] sm:$0xff] }
 0x16c   :  { %v6120_v20 = vsel %vm4441_vm12, 4294967295, %v6119_v20  ;;  %v6123_v36 = vsel %vm4448_vm0, 4294967295, %v6122_v36  ;;  %vm4455_vm2 = vcmp.eq.s32.totalorder %v6124_v44, 1  ;;  %v4462_v11 = vsel %vm6127_vm8, %v4205_v37, %v964_v2 }
 0x16d   :  { %v6126_v51 = vsel %vm4455_vm2, 4294967295, %v6125_v51  ;;  %vm6128_vm12 = vnez %v5943_v18  ;;  %vm6129_vm0 = vnez %v5946_v7  ;;  %vm6130_vm1 = vnez %v5949_v14 }
 0x16e   :  { %v4467_v30 = vsel %vm6128_vm12, %v4205_v37, %v965_v33  ;;  %v4472_v56 = vsel %vm6129_vm0, %v4205_v37, %v966_v46  ;;  %v4477_v60 = vsel %vm6130_vm1, %v4205_v37, %v967_v53  ;;  %v6132_v2 = vrot.slane %v6131_v8, %v1910_v21 }
 0x16f   :  { %v6133_v44 = vmov 0  ;;  %v6135_v18 = vrot.slane %v6131_v8, %v1912_v22  ;;  %v6136_v7 = vmov 0  ;;  %v6138_v14 = vrot.slane %v6131_v8, %v1914_v23 }
 0x170   :  { %vm4484_vm8 = vcmp.eq.s32.totalorder %v6132_v2, 1  ;;  %v6139_v46 = vmov 0  ;;  %v6142_v33 = vrot.slane %v6131_v8, %v1919_v24 }
 0x171   :  { %v6134_v44 = vsel %vm4484_vm8, 4294967295, %v6133_v44  ;;  %vm4491_vm12 = vcmp.eq.s32.totalorder %v6135_v18, 1  ;;  %vm4498_vm1 = vcmp.eq.s32.totalorder %v6138_v14, 1  ;;  %vm6145_vm8 = vnez %v5957_v48 }
 0x172   :  { %v6137_v7 = vsel %vm4491_vm12, 4294967295, %v6136_v7  ;;  %v6140_v46 = vsel %vm4498_vm1, 4294967295, %v6139_v46  ;;  %vm4505_vm0 = vcmp.eq.s32.totalorder %v6142_v33, 1  ;;  %v4512_v2 = vsel %vm6145_vm8, %v4205_v37, %v968_v31  ;;  %v6148_v33 = vld [vmem:[#allocation32_spill] sm:$0xff] }
 0x173   :  { %6141 = vst [vmem:[#allocation18_spill] sm:$0xff] %v6140_v46  ;;  %vm6146_vm12 = vnez %v5960_v32  ;;  %vm6147_vm1 = vnez %v5963_v17  ;;  %vm6149_vm2 = vnez %v6148_v33  ;;  %v6150_v48 = vrot.slane %v6131_v8, %v1921_v25 }
 0x174   :  { %v4517_v18 = vsel %vm6146_vm12, %v4205_v37, %v969_v61  ;;  %v4522_v14 = vsel %vm6147_vm1, %v4205_v37, %v970_v52  ;;  %v4527_v46 = vsel %vm6149_vm2, %v4205_v37, %v971_v40  ;;  %v6151_v31 = vmov 0 }
 0x175   :  { %vm4532_vm8 = vcmp.eq.s32.totalorder %v6150_v48, 1  ;;  %v6153_v32 = vrot.slane %v6131_v8, %v1923_v26  ;;  %v6154_v61 = vmov 0  ;;  %v6156_v17 = vrot.slane %v6131_v8, %v1928_v28 }
 0x176   :  { %v6152_v31 = vsel %vm4532_vm8, 4294967295, %v6151_v31  ;;  %v6157_v52 = vmov 0  ;;  %v6160_v40 = vrot.slane %v6131_v8, %v1930_v29  ;;  %v6161_v33 = vmov 0 }
 0x177   :  { %vm4539_vm12 = vcmp.eq.s32.totalorder %v6153_v32, 1  ;;  %vm4546_vm1 = vcmp.eq.s32.totalorder %v6156_v17, 1  ;;  %vm6164_vm8 = vnez %v5975_v38  ;;  %v1078_v17 = vsel %vm4088_vm10, %v4205_v37, %v974_v62 }
 0x178   :  { %v6155_v61 = vsel %vm4539_vm12, 4294967295, %v6154_v61  ;;  %v6158_v52 = vsel %vm4546_vm1, 4294967295, %v6157_v52  ;;  %vm4553_vm2 = vcmp.eq.s32.totalorder %v6160_v40, 1  ;;  %v1076_v48 = vsel %vm6164_vm8, %v4205_v37, %v972_v41  ;;  %v6167_v40 = vld [vmem:[#allocation25_spill] sm:$0xff] }
 0x179   :  { %6159 = vst [vmem:[#allocation19_spill] sm:$0xff] %v6158_v52  ;;  %v6162_v33 = vsel %vm4553_vm2, 4294967295, %v6161_v33  ;;  %vm6165_vm12 = vnez %v5978_v15  ;;  %vm6166_vm1 = vnez %v5984_v50  ;;  %v6168_v52 = vrot.slane %v6167_v40, %v1910_v21 }
 0x17a   :  { %6163 = vst [vmem:[#allocation40_spill] sm:$0xff] %v6162_v33  ;;  %v1077_v32 = vsel %vm6165_vm12, %v4205_v37, %v973_v63  ;;  %v1079_v8 = vsel %vm6166_vm1, %v4205_v37, %v975_v47  ;;  %v6171_v38 = vrot.slane %v6167_v40, %v1912_v22  ;;  %v6174_v58 = vrot.slane %v6167_v40, %v1914_v23  ;;  %v6180_v47 = vld [vmem:[#allocation16_spill] sm:$0xff] }
 0x17b   :  { %vm4572_vm2 = vcmp.eq.s32.totalorder %v6168_v52, 1  ;;  %v6175_v50 = vmov 0  ;;  %v6177_v37 = vrot.slane %v6167_v40, %v1919_v24  ;;  %v6178_v41 = vmov 0 }
 0x17c   :  { %vm4579_vm8 = vcmp.eq.s32.totalorder %v6171_v38, 1  ;;  %vm4586_vm10 = vcmp.eq.s32.totalorder %v6174_v58, 1  ;;  %v1168_v63 = vsel %vm4120_vm4, %v4479_v16, %v4414_v27  ;;  %v1169_v62 = vsel %vm4127_vm11, %v4479_v16, %v4419_v3  ;;  %v6182_v38 = vld [vmem:[#allocation33_spill] sm:$0xff] }
 0x17d   :  { %v6176_v50 = vsel %vm4586_vm10, 4294967295, %v6175_v50  ;;  %vm4593_vm12 = vcmp.eq.s32.totalorder %v6177_v37, 1  ;;  %vm6181_vm1 = vnez %v6180_v47  ;;  %vm6183_vm10 = vnez %v6182_v38 }
 0x17e   :  { %v6179_v41 = vsel %vm4593_vm12, 4294967295, %v6178_v41  ;;  %v1170_v52 = vsel %vm6181_vm1, %v4479_v16, %v4424_v57  ;;  %v1171_v58 = vsel %vm6183_vm10, %v4479_v16, %v4429_v55  ;;  %v6184_v37 = vrot.slane %v6167_v40, %v1921_v25 }
 0x17f   :  { %v6187_v39 = vrot.slane %v6167_v40, %v1923_v26  ;;  %v6188_v27 = vmov 0  ;;  %v6191_v3 = vrot.slane %v6167_v40, %v1928_v28  ;;  %v6192_v57 = vmov 0 }
 0x180   :  { %vm4616_vm12 = vcmp.eq.s32.totalorder %v6184_v37, 1  ;;  %v6195_v55 = vrot.slane %v6167_v40, %v1930_v29  ;;  %v6196_v47 = vmov 0  ;;  %v1172_v38 = vsel %vm4164_vm7, %v4479_v16, %v4462_v11 }
 0x181   :  { %vm4623_vm4 = vcmp.eq.s32.totalorder %v6187_v39, 1  ;;  %vm4630_vm11 = vcmp.eq.s32.totalorder %v6191_v3, 1  ;;  %v1173_v39 = vsel %vm4171_vm14, %v4479_v16, %v4467_v30  ;;  %v6207_v37 = vmov 0 }
 0x182   :  { %v6189_v27 = vsel %vm4623_vm4, 4294967295, %v6188_v27  ;;  %v6193_v57 = vsel %vm4630_vm11, 4294967295, %v6192_v57  ;;  %vm4637_vm10 = vcmp.eq.s32.totalorder %v6195_v55, 1  ;;  %v1175_v55 = vsel %vm4185_vm13, %v4479_v16, %v4477_v60 }
 0x183   :  { %6190 = vst [vmem:[#allocation20_spill] sm:$0xff] %v6189_v27  ;;  %6194 = vst [vmem:[#allocation41_spill] sm:$0xff] %v6193_v57  ;;  %v6197_v47 = vsel %vm4637_vm10, 4294967295, %v6196_v47  ;;  %v1174_v57 = vsel %vm4178_vm15, %v4479_v16, %v4472_v56  ;;  %v6202_v27 = vld [vmem:[#allocation26_spill] sm:$0xff]  ;;  %v6211_v60 = vmov 0  ;;  %v6215_v40 = vmov 0 }
 0x184   :  { %6198 = vst [vmem:[#allocation42_spill] sm:$0xff] %v6197_v47  ;;  %v1270_v47 = vpop.permute.xlu0 %1269  ;;  %v6203_v10 = vrot.slane %v6202_v27, %v1910_v21  ;;  %v6206_v30 = vrot.slane %v6202_v27, %v1912_v22  ;;  %v6210_v56 = vrot.slane %v6202_v27, %v1914_v23  ;;  %v6214_v3 = vrot.slane %v6202_v27, %v1919_v24 }
 0x185   :  { %v6223_v1 = vrot.slane %v6202_v27, %v1923_v26  ;;  %v6227_v0 = vrot.slane %v6202_v27, %v1928_v28 }
 0x186   :  { %vm4660_vm7 = vcmp.eq.s32.totalorder %v6203_v10, 1  ;;  %vm4667_vm14 = vcmp.eq.s32.totalorder %v6206_v30, 1  ;;  %vm4674_vm15 = vcmp.eq.s32.totalorder %v6210_v56, 1  ;;  %vm4681_vm13 = vcmp.eq.s32.totalorder %v6214_v3, 1  ;;  %v6236_v3 = vld [vmem:[#allocation17_spill] sm:$0xff] }
 0x187   :  { %v6208_v37 = vsel %vm4667_vm14, 4294967295, %v6207_v37  ;;  %v6212_v60 = vsel %vm4674_vm15, 4294967295, %v6211_v60  ;;  %v6216_v40 = vsel %vm4681_vm13, 4294967295, %v6215_v40  ;;  %v1176_v10 = vsel %vm4210_vm6, %v4479_v16, %v4512_v2 }
 0x188   :  { %6209 = vst [vmem:[#allocation12_spill] sm:$0xff] %v6208_v37  ;;  %6213 = vst [vmem:[#allocation43_spill] sm:$0xff] %v6212_v60  ;;  %v1177_v30 = vsel %vm4217_vm5, %v4479_v16, %v4517_v18  ;;  %v1178_v56 = vsel %vm4224_vm3, %v4479_v16, %v4522_v14  ;;  %v6219_v60 = vrot.slane %v6202_v27, %v1921_v25  ;;  %vm4711_vm6 = vcmp.eq.s32.totalorder %v6223_v1, 1 }
 0x189   :  { %6217 = vst [vmem:[#allocation21_spill] sm:$0xff] %v6216_v40  ;;  %v1179_v40 = vsel %vm4231_vm9, %v4479_v16, %v4527_v46  ;;  %v6224_v2 = vmov 0  ;;  %vm4718_vm5 = vcmp.eq.s32.totalorder %v6227_v0, 1  ;;  %v6228_v18 = vmov 0  ;;  %v6238_v0 = vld [vmem:[#allocation37_spill] sm:$0xff] }
 0x18a   :  { %vm4704_vm1 = vcmp.eq.s32.totalorder %v6219_v60, 1  ;;  %v6225_v2 = vsel %vm4711_vm6, 4294967295, %v6224_v2  ;;  %v6229_v18 = vsel %vm4718_vm5, 4294967295, %v6228_v18  ;;  %v6231_v46 = vrot.slane %v6202_v27, %v1930_v29 }
 0x18b   :  { %v6221_v45 = vsel %vm4704_vm1, 4294967295, %v6220_v45  ;;  %6226 = vst [vmem:[#allocation45_spill] sm:$0xff] %v6225_v2  ;;  %6230 = vst [vmem:[#allocation13_spill] sm:$0xff] %v6229_v18  ;;  %v6232_v14 = vmov 0  ;;  %vm6235_vm9 = vnez %v6042_v59  ;;  %vm6237_vm6 = vnez %v6236_v3  ;;  %v6240_v18 = vld [vmem:[#allocation38_spill] sm:$0xff] }
 0x18c   :  { %6222 = vst [vmem:[#allocation44_spill] sm:$0xff] %v6221_v45  ;;  %vm4725_vm3 = vcmp.eq.s32.totalorder %v6231_v46, 1  ;;  %v1180_v60 = vsel %vm6235_vm9, %v4479_v16, %v1076_v48  ;;  %v1181_v1 = vsel %vm6237_vm6, %v4479_v16, %v1077_v32  ;;  %vm6239_vm1 = vnez %v6238_v0  ;;  %v1374_v46 = vpop.permute.xlu1 %1373  ;;  %v6242_v45 = vld [vmem:[#allocation27_spill] sm:$0xff] }
 0x18d   :  { %v6233_v14 = vsel %vm4725_vm3, 4294967295, %v6232_v14  ;;  %v1182_v2 = vsel %vm6239_vm1, %v4479_v16, %v1078_v17  ;;  %vm6241_vm5 = vnez %v6240_v18  ;;  %v6244_v37 = vmov 0  ;;  %v6258_v0 = vld [vmem:[#allocation39_spill] sm:$0xff] }
 0x18e   :  { %6234 = vst [vmem:[#allocation14_spill] sm:$0xff] %v6233_v14  ;;  %v1183_v27 = vsel %vm6241_vm5, %v4479_v16, %v1079_v8  ;;  %v6243_v14 = vrot.slane %v6242_v45, %v1910_v21  ;;  %v6246_v59 = vrot.slane %v6242_v45, %v1912_v22  ;;  %v6247_v48 = vmov 0 }
 0x18f   :  { %v6249_v32 = vrot.slane %v6242_v45, %v1914_v23  ;;  %v6250_v16 = vmov 0  ;;  %v6252_v17 = vrot.slane %v6242_v45, %v1919_v24  ;;  %v6253_v8 = vmov 0 }
 0x190   :  { %vm4744_vm3 = vcmp.eq.s32.totalorder %v6243_v14, 1  ;;  %vm4751_vm6 = vcmp.eq.s32.totalorder %v6246_v59, 1  ;;  %vm6255_vm9 = vnez %v6065_v5  ;;  %vm6259_vm13 = vnez %v6258_v0 }
 0x191   :  { %v6245_v37 = vsel %vm4744_vm3, 4294967295, %v6244_v37  ;;  %v6248_v48 = vsel %vm4751_vm6, 4294967295, %v6247_v48  ;;  %vm4758_vm1 = vcmp.eq.s32.totalorder %v6249_v32, 1  ;;  %vm4765_vm5 = vcmp.eq.s32.totalorder %v6252_v17, 1 }
 0x192   :  { %v6251_v16 = vsel %vm4758_vm1, 4294967295, %v6250_v16  ;;  %v6254_v8 = vsel %vm4765_vm5, 4294967295, %v6253_v8  ;;  %v1272_v18 = vsel %vm6255_vm9, %v1270_v47, %v1168_v63  ;;  %vm6256_vm3 = vnez %v6068_v49 }
 0x193   :  { %v1273_v14 = vsel %vm6256_vm3, %v1270_v47, %v1169_v62  ;;  %vm6257_vm6 = vnez %v6071_v42  ;;  %v1275_v59 = vsel %vm6259_vm13, %v1270_v47, %v1171_v58  ;;  %v6260_v32 = vrot.slane %v6242_v45, %v1921_v25 }
 0x194   :  { %v1274_v3 = vsel %vm6257_vm6, %v1270_v47, %v1170_v52  ;;  %v6261_v17 = vmov 0  ;;  %v6263_v5 = vrot.slane %v6242_v45, %v1923_v26  ;;  %v6264_v63 = vmov 0 }
 0x195   :  { %vm4780_vm1 = vcmp.eq.s32.totalorder %v6260_v32, 1  ;;  %v6266_v49 = vrot.slane %v6242_v45, %v1928_v28  ;;  %v6267_v42 = vmov 0  ;;  %v6269_v62 = vrot.slane %v6242_v45, %v1930_v29 }
 0x196   :  { %v6262_v17 = vsel %vm4780_vm1, 4294967295, %v6261_v17  ;;  %vm4787_vm9 = vcmp.eq.s32.totalorder %v6263_v5, 1  ;;  %v6270_v52 = vmov 0  ;;  %vm6272_vm6 = vnez %v6083_v13 }
 0x197   :  { %v6265_v63 = vsel %vm4787_vm9, 4294967295, %v6264_v63  ;;  %vm4794_vm3 = vcmp.eq.s32.totalorder %v6266_v49, 1  ;;  %vm4801_vm13 = vcmp.eq.s32.totalorder %v6269_v62, 1  ;;  %v1276_v58 = vsel %vm6272_vm6, %v1270_v47, %v1172_v38  ;;  %v6292_v38 = vld [vmem:[#allocation40_spill] sm:$0xff] }
 0x198   :  { %v6268_v42 = vsel %vm4794_vm3, 4294967295, %v6267_v42  ;;  %v6271_v52 = vsel %vm4801_vm13, 4294967295, %v6270_v52  ;;  %vm6273_vm1 = vnez %v6086_v35  ;;  %vm6274_vm9 = vnez %v6089_v43 }
 0x199   :  { %v1277_v0 = vsel %vm6273_vm1, %v1270_v47, %v1173_v39  ;;  %v1278_v32 = vsel %vm6274_vm9, %v1270_v47, %v1174_v57  ;;  %vm6275_vm5 = vnez %v6092_v12  ;;  %vm6276_vm3 = vnez %v6100_v34 }
 0x19a   :  { %v1279_v5 = vsel %vm6275_vm5, %v1270_v47, %v1175_v55  ;;  %v1280_v49 = vsel %vm6276_vm3, %v1270_v47, %v1176_v10  ;;  %vm6277_vm15 = vnez %v6103_v9  ;;  %vm6278_vm13 = vnez %v6106_v19 }
 0x19b   :  { %v1281_v45 = vsel %vm6277_vm15, %v1270_v47, %v1177_v30  ;;  %v1282_v62 = vsel %vm6278_vm13, %v1270_v47, %v1178_v56  ;;  %vm6279_vm6 = vnez %v6109_v4  ;;  %vm6280_vm1 = vnez %v6117_v6  ;;  %v6286_v4 = vld [vmem:[#allocation18_spill] sm:$0xff] }
 0x19c   :  { %v1283_v13 = vsel %vm6279_vm6, %v1270_v47, %v1179_v40  ;;  %v1284_v35 = vsel %vm6280_vm1, %v1270_v47, %v1180_v60  ;;  %vm6281_vm9 = vnez %v6120_v20  ;;  %vm6282_vm5 = vnez %v6123_v36  ;;  %v1478_v20 = vpop.permute.xlu1 %1477  ;;  %v6300_v60 = vld [vmem:[#allocation43_spill] sm:$0xff] }
 0x19d   :  { %v1285_v43 = vsel %vm6281_vm9, %v1270_v47, %v1181_v1  ;;  %v1286_v12 = vsel %vm6282_vm5, %v1270_v47, %v1182_v2  ;;  %vm6283_vm3 = vnez %v6126_v51  ;;  %vm6284_vm15 = vnez %v6134_v44  ;;  %v6302_v1 = vld [vmem:[#allocation21_spill] sm:$0xff] }
 0x19e   :  { %v1287_v34 = vsel %vm6283_vm3, %v1270_v47, %v1183_v27  ;;  %v1376_v9 = vsel %vm6284_vm15, %v1374_v46, %v1272_v18  ;;  %vm6285_vm13 = vnez %v6137_v7  ;;  %vm6287_vm6 = vnez %v6286_v4  ;;  %v6290_v47 = vld [vmem:[#allocation19_spill] sm:$0xff]  ;;  %v6304_v18 = vld [vmem:[#allocation44_spill] sm:$0xff] }
 0x19f   :  { %v1377_v19 = vsel %vm6285_vm13, %v1374_v46, %v1273_v14  ;;  %v1378_v57 = vsel %vm6287_vm6, %v1374_v46, %v1274_v3  ;;  %v1379_v6 = vsel %vm4505_vm0, %v1374_v46, %v1275_v59  ;;  %vm6288_vm1 = vnez %v6152_v31  ;;  %v6308_v3 = vld [vmem:[#allocation13_spill] sm:$0xff] }
 0x1a0   :  { %v1380_v36 = vsel %vm6288_vm1, %v1374_v46, %v1276_v58  ;;  %vm6289_vm9 = vnez %v6155_v61  ;;  %vm6291_vm5 = vnez %v6290_v47  ;;  %vm6293_vm3 = vnez %v6292_v38  ;;  %v6310_v58 = vld [vmem:[#allocation14_spill] sm:$0xff] }
 0x1a1   :  { %v1381_v51 = vsel %vm6289_vm9, %v1374_v46, %v1277_v0  ;;  %v1382_v44 = vsel %vm6291_vm5, %v1374_v46, %v1278_v32  ;;  %v1383_v7 = vsel %vm6293_vm3, %v1374_v46, %v1279_v5  ;;  %v1384_v39 = vsel %vm4572_vm2, %v1374_v46, %v1280_v49 }
 0x1a2   :  { %v1385_v53 = vsel %vm4579_vm8, %v1374_v46, %v1281_v45  ;;  %vm6294_vm0 = vnez %v6176_v50  ;;  %vm6295_vm15 = vnez %v6179_v41  ;;  %v1388_v61 = vsel %vm4616_vm12, %v1374_v46, %v1284_v35 }
 0x1a3   :  { %v1386_v55 = vsel %vm6294_vm0, %v1374_v46, %v1282_v62  ;;  %v1387_v31 = vsel %vm6295_vm15, %v1374_v46, %v1283_v13  ;;  %v1389_v10 = vsel %vm4623_vm4, %v1374_v46, %v1285_v43  ;;  %v1390_v56 = vsel %vm4630_vm11, %v1374_v46, %v1286_v12 }
 0x1a4   :  { %v1391_v2 = vsel %vm4637_vm10, %v1374_v46, %v1287_v34  ;;  %v4863_v15 = vsel %vm4660_vm7, %v1478_v20, %v1376_v9  ;;  %v4867_v41 = vsel %vm4667_vm14, %v1478_v20, %v1377_v19  ;;  %vm6301_vm2 = vnez %v6300_v60  ;;  %v6306_v46 = vld [vmem:[#allocation45_spill] sm:$0xff] }
 0x1a5   :  { %v4871_v54 = vsel %vm6301_vm2, %v1478_v20, %v1378_v57  ;;  %vm6303_vm8 = vnez %v6302_v1  ;;  %vm6305_vm12 = vnez %v6304_v18  ;;  %vm6307_vm4 = vnez %v6306_v46  ;;  %v6321_v34 = vld [vmem:[#allocation29_spill] sm:$0xff] }
 0x1a6   :  { %v4875_v27 = vsel %vm6303_vm8, %v1478_v20, %v1379_v6  ;;  %v4879_v14 = vsel %vm6305_vm12, %v1478_v20, %v1380_v36  ;;  %v4883_v11 = vsel %vm6307_vm4, %v1478_v20, %v1381_v51  ;;  %vm6309_vm11 = vnez %v6308_v3 }
 0x1a7   :  { %v4887_v59 = vsel %vm6309_vm11, %v1478_v20, %v1382_v44  ;;  %vm6311_vm10 = vnez %v6310_v58  ;;  %vm6312_vm7 = vnez %v6245_v37  ;;  %vm6313_vm14 = vnez %v6248_v48 }
 0x1a8   :  { %v4891_v0 = vsel %vm6311_vm10, %v1478_v20, %v1383_v7  ;;  %v4895_v32 = vsel %vm6312_vm7, %v1478_v20, %v1384_v39  ;;  %v4899_v5 = vsel %vm6313_vm14, %v1478_v20, %v1385_v53  ;;  %vm6314_vm13 = vnez %v6251_v16  ;;  %v4973_v39 = vpop.permute.xlu0 %1581 }
 0x1a9   :  { %v4903_v49 = vsel %vm6314_vm13, %v1478_v20, %v1386_v55  ;;  %vm6315_vm6 = vnez %v6254_v8  ;;  %vm6316_vm1 = vnez %v6262_v17  ;;  %vm6317_vm9 = vnez %v6265_v63  ;;  %v6320_v8 = vld [vmem:[#allocation28_spill] sm:$0xff] }
 0x1aa   :  { %v4907_v45 = vsel %vm6315_vm6, %v1478_v20, %v1387_v31  ;;  %v4911_v62 = vsel %vm6316_vm1, %v1478_v20, %v1388_v61  ;;  %v4915_v37 = vsel %vm6317_vm9, %v1478_v20, %v1389_v10  ;;  %vm6318_vm5 = vnez %v6268_v42 }
 0x1ab   :  { %v4919_v48 = vsel %vm6318_vm5, %v1478_v20, %v1390_v56  ;;  %vm6319_vm3 = vnez %v6271_v52  ;;  %v1503_v13 = vrot.slane %v6320_v8, %v1910_v21  ;;  %v1507_v17 = vrot.slane %v6320_v8, %v1912_v22 }
 0x1ac   :  { %v4923_v16 = vsel %vm6319_vm3, %v1478_v20, %v1391_v2  ;;  %v1511_v35 = vrot.slane %v6320_v8, %v1914_v23  ;;  %v1515_v63 = vrot.slane %v6320_v8, %v1919_v24  ;;  %v1519_v42 = vrot.slane %v6320_v8, %v1921_v25 }
 0x1ad   :  { %v1523_v52 = vrot.slane %v6320_v8, %v1923_v26  ;;  %v1527_v43 = vrot.slane %v6320_v8, %v1928_v28  ;;  %v1531_v12 = vrot.slane %v6320_v8, %v1930_v29  ;;  %v1535_v9 = vrot.slane %v6321_v34, %v1910_v21  ;;  %v1773_v8 = vld [vmem:[#allocation2 + $0x8] sm:$0xff] }
 0x1ae   :  { %v1539_v19 = vrot.slane %v6321_v34, %v1912_v22  ;;  %v1543_v4 = vrot.slane %v6321_v34, %v1914_v23  ;;  %v1547_v57 = vrot.slane %v6321_v34, %v1919_v24  ;;  %v1551_v6 = vrot.slane %v6321_v34, %v1921_v25 }
 0x1af   :  { %v1555_v20 = vrot.slane %v6321_v34, %v1923_v26  ;;  %v1559_v36 = vrot.slane %v6321_v34, %v1928_v28  ;;  %v1563_v51 = vrot.slane %v6321_v34, %v1930_v29  ;;  %vm4957_vm0 = vcmp.eq.s32.totalorder %v1503_v13, 1 }
 0x1b0   :  { %vm4961_vm15 = vcmp.eq.s32.totalorder %v1507_v17, 1  ;;  %vm4965_vm2 = vcmp.eq.s32.totalorder %v1511_v35, 1  ;;  %vm4969_vm8 = vcmp.eq.s32.totalorder %v1515_v63, 1  ;;  %vm4975_vm12 = vcmp.eq.s32.totalorder %v1519_v42, 1 }
 0x1b1   :  { %vm4979_vm4 = vcmp.eq.s32.totalorder %v1523_v52, 1  ;;  %vm4983_vm11 = vcmp.eq.s32.totalorder %v1527_v43, 1  ;;  %vm4987_vm10 = vcmp.eq.s32.totalorder %v1531_v12, 1  ;;  %vm4991_vm7 = vcmp.eq.s32.totalorder %v1535_v9, 1 }
 0x1b2   :  { %vm4995_vm14 = vcmp.eq.s32.totalorder %v1539_v19, 1  ;;  %vm4999_vm13 = vcmp.eq.s32.totalorder %v1543_v4, 1  ;;  %vm5003_vm6 = vcmp.eq.s32.totalorder %v1547_v57, 1  ;;  %vm5007_vm1 = vcmp.eq.s32.totalorder %v1551_v6, 1 }
 0x1b3   :  { %vm5011_vm9 = vcmp.eq.s32.totalorder %v1555_v20, 1  ;;  %vm5015_vm5 = vcmp.eq.s32.totalorder %v1559_v36, 1  ;;  %vm5019_vm3 = vcmp.eq.s32.totalorder %v1563_v51, 1  ;;  %v1584_v1 = vsel %vm4957_vm0, %v4973_v39, %v4863_v15 }
 0x1b4   :  { %v1585_v18 = vsel %vm4961_vm15, %v4973_v39, %v4867_v41  ;;  %v1586_v46 = vsel %vm4965_vm2, %v4973_v39, %v4871_v54  ;;  %v1587_v3 = vsel %vm4969_vm8, %v4973_v39, %v4875_v27  ;;  %v1588_v15 = vsel %vm4975_vm12, %v4973_v39, %v4879_v14 }
 0x1b5   :  { %v1589_v41 = vsel %vm4979_vm4, %v4973_v39, %v4883_v11  ;;  %v1590_v54 = vsel %vm4983_vm11, %v4973_v39, %v4887_v59  ;;  %v1591_v27 = vsel %vm4987_vm10, %v4973_v39, %v4891_v0  ;;  %v1592_v14 = vsel %vm4991_vm7, %v4973_v39, %v4895_v32 }
 0x1b6   :  { %v1593_v11 = vsel %vm4995_vm14, %v4973_v39, %v4899_v5  ;;  %v1594_v59 = vsel %vm4999_vm13, %v4973_v39, %v4903_v49  ;;  %v1595_v58 = vsel %vm5003_vm6, %v4973_v39, %v4907_v45  ;;  %v1596_v0 = vsel %vm5007_vm1, %v4973_v39, %v4911_v62  ;;  %v1772_v5 = vld [vmem:[#allocation2] sm:$0xff] }
 0x1b7   :  { %v1597_v32 = vsel %vm5011_vm9, %v4973_v39, %v4915_v37  ;;  %vm1600_vm0 = vcmp.eq.s32.totalorder %v1772_v5, 15  ;;  %vm1601_vm15 = vcmp.eq.s32.totalorder %v1773_v8, 15  ;;  %v1598_v49 = vsel %vm5015_vm5, %v4973_v39, %v4919_v48 }
 0x1b8   :  { %v1599_v45 = vsel %vm5019_vm3, %v4973_v39, %v4923_v16  ;;  %v6354_v13 = vmov 0  }
 0x1b9   :  { %v1602_v17 = vsel %vm1600_vm0, 1, %v6354_v13  ;;  %v1603_v35 = vsel %vm1601_vm15, 1, %v6354_v13 }
 0x1ba   :  { %v1607_v63 = vrot.slane %v1602_v17, %v1910_v21  ;;  %v1611_v42 = vrot.slane %v1602_v17, %v1912_v22  ;;  %v1615_v52 = vrot.slane %v1602_v17, %v1914_v23  ;;  %v1619_v43 = vrot.slane %v1602_v17, %v1919_v24 }
 0x1bb   :  { %v1623_v12 = vrot.slane %v1602_v17, %v1921_v25  ;;  %v1627_v34 = vrot.slane %v1602_v17, %v1923_v26  ;;  %v1631_v9 = vrot.slane %v1602_v17, %v1928_v28  ;;  %v1635_v19 = vrot.slane %v1602_v17, %v1930_v29 }
 0x1bc   :  { %v1639_v4 = vrot.slane %v1603_v35, %v1910_v21  ;;  %v1643_v57 = vrot.slane %v1603_v35, %v1912_v22  ;;  %v1647_v6 = vrot.slane %v1603_v35, %v1914_v23  ;;  %v1651_v20 = vrot.slane %v1603_v35, %v1919_v24  ;;  %v1686_v24 = vpop.permute.xlu1 %1685 }
 0x1bd   :  { %v1655_v36 = vrot.slane %v1603_v35, %v1921_v25  ;;  %v1659_v51 = vrot.slane %v1603_v35, %v1923_v26  ;;  %v1663_v47 = vrot.slane %v1603_v35, %v1928_v28  ;;  %v1667_v44 = vrot.slane %v1603_v35, %v1930_v29 }
 0x1be   :  { %vm5105_vm2 = vcmp.eq.s32.totalorder %v1607_v63, 1  ;;  %vm5109_vm8 = vcmp.eq.s32.totalorder %v1611_v42, 1  ;;  %vm5113_vm12 = vcmp.eq.s32.totalorder %v1615_v52, 1  ;;  %vm5117_vm4 = vcmp.eq.s32.totalorder %v1619_v43, 1 }
 0x1bf   :  { %vm5121_vm11 = vcmp.eq.s32.totalorder %v1623_v12, 1  ;;  %vm5125_vm10 = vcmp.eq.s32.totalorder %v1627_v34, 1  ;;  %vm5129_vm7 = vcmp.eq.s32.totalorder %v1631_v9, 1  ;;  %vm5133_vm14 = vcmp.eq.s32.totalorder %v1635_v19, 1 }
 0x1c0   :  { %vm5137_vm13 = vcmp.eq.s32.totalorder %v1639_v4, 1  ;;  %vm5141_vm6 = vcmp.eq.s32.totalorder %v1643_v57, 1  ;;  %vm5145_vm0 = vcmp.eq.s32.totalorder %v1647_v6, 1  ;;  %vm5149_vm15 = vcmp.eq.s32.totalorder %v1651_v20, 1 }
 0x1c1   :  { %vm5153_vm3 = vcmp.eq.s32.totalorder %v1655_v36, 1  ;;  %vm5157_vm5 = vcmp.eq.s32.totalorder %v1659_v51, 1  ;;  %vm5161_vm9 = vcmp.eq.s32.totalorder %v1663_v47, 1  ;;  %vm5165_vm1 = vcmp.eq.s32.totalorder %v1667_v44, 1 }
 0x1c2   :  { %v1688_v56 = vsel %vm5105_vm2, %v1686_v24, %v1584_v1  ;;  %v1689_v5 = vsel %vm5109_vm8, %v1686_v24, %v1585_v18  ;;  %v1690_v8 = vsel %vm5113_vm12, %v1686_v24, %v1586_v46  ;;  %v1691_v13 = vsel %vm5117_vm4, %v1686_v24, %v1587_v3 }
 0x1c3   :  { %v1692_v17 = vsel %vm5121_vm11, %v1686_v24, %v1588_v15  ;;  %v1693_v35 = vsel %vm5125_vm10, %v1686_v24, %v1589_v41  ;;  %v1694_v63 = vsel %vm5129_vm7, %v1686_v24, %v1590_v54  ;;  %v1695_v1 = vsel %vm5133_vm14, %v1686_v24, %v1591_v27  ;;  %1704 = vst [vmem:[#allocation7] sm:$0xff] %v1688_v56 }
 0x1c4   :  { %1705 = vst [vmem:[#allocation7 + $0x8] sm:$0xff] %v1689_v5  ;;  %1706 = vst [vmem:[#allocation7 + $0x10] sm:$0xff] %v1690_v8  ;;  %v1696_v18 = vsel %vm5137_vm13, %v1686_v24, %v1592_v14  ;;  %v1697_v46 = vsel %vm5141_vm6, %v1686_v24, %v1593_v11  ;;  %v1698_v3 = vsel %vm5145_vm0, %v1686_v24, %v1594_v59 }
 0x1c5   :  { %1707 = vst [vmem:[#allocation7 + $0x18] sm:$0xff] %v1691_v13  ;;  %v1699_v15 = vsel %vm5149_vm15, %v1686_v24, %v1595_v58  ;;  %1708 = vst [vmem:[#allocation7 + $0x20] sm:$0xff] %v1692_v17  ;;  %v1700_v41 = vsel %vm5153_vm3, %v1686_v24, %v1596_v0  ;;  %v1701_v54 = vsel %vm5157_vm5, %v1686_v24, %v1597_v32 }
 0x1c6   :  { %1709 = vst [vmem:[#allocation7 + $0x28] sm:$0xff] %v1693_v35  ;;  %1710 = vst [vmem:[#allocation7 + $0x30] sm:$0xff] %v1694_v63  ;;  %v1702_v33 = vsel %vm5161_vm9, %v1686_v24, %v1598_v49  ;;  %v1703_v62 = vsel %vm5165_vm1, %v1686_v24, %v1599_v45 }
 0x1c7   :  { %1711 = vst [vmem:[#allocation7 + $0x38] sm:$0xff] %v1695_v1  ;;  %1712 = vst [vmem:[#allocation7 + $0x40] sm:$0xff] %v1696_v18 }
 0x1c8   :  { %1713 = vst [vmem:[#allocation7 + $0x48] sm:$0xff] %v1697_v46  ;;  %1714 = vst [vmem:[#allocation7 + $0x50] sm:$0xff] %v1698_v3 }
 0x1c9   :  { %1715 = vst [vmem:[#allocation7 + $0x58] sm:$0xff] %v1699_v15  ;;  %1716 = vst [vmem:[#allocation7 + $0x60] sm:$0xff] %v1700_v41 }
 0x1ca   :  { %1717 = vst [vmem:[#allocation7 + $0x68] sm:$0xff] %v1701_v54  ;;  %1718 = vst [vmem:[#allocation7 + $0x70] sm:$0xff] %v1702_v33 }
 0x1cb   :  { %1719 = vst [vmem:[#allocation7 + $0x78] sm:$0xff] %v1703_v62 }
 0x1cc   :  { %1829 = shalt.err (!%p1826_p6)
}
 0x1cd   :  { %s1830_s8 = scalar_lea.hbm %s5235_s2, 2048 }
 0x1ce   :  { %p1831_p7 = scmp.ne.s32.totalorder %s5235_s2, %s1830_s8  ;;  %p1834_p8 = scmp.lt.u32.totalorder %s1830_s8, %s5235_s2 }
 0x1d0   :  { %p1836_p9 = pnand %p1834_p8, %p1831_p7 }
 0x1d2   :  { %1839 = shalt.err (!%p1836_p9)
}
 0x1d3   :  { %1729 = dma.vmem_to_hbm [thread:$0]  %s1727_s4, 2048, %s5235_s2, [#allocation4]  }
 0x1d4   :  { %1844 = dma.done.wait [#allocation4], 2048  }
 0x1d5   :  { %1845 = vsyncadd [#allocation4], 4294965248 }
 0x1d6   :  { %1733 = vsyncpa [#allocation3], 1 }
 0x1d7   :  { %1734 = vsyncpa [#allocation6], 1 }
 0x1d8   :  { %1735 = vsyncpa [#allocation4], 1 }

</bundles_post_ra>
